<compile_context>
chip_gen: v7x
topology: tpu7x:2x2x1
jax: 0.10.0
libtpu: 0.0.40
codegen_flags: <defaults>
</compile_context>

<pallas_src>
import jax
import jax.numpy as jnp
from jax.experimental import pallas as pl
from jax.experimental.pallas import tpu as pltpu


def lstm_classify_kernel(x_ref,
                         wih0_ref, b0_ref, whh0_ref,
                         w1_ref, b1_ref,
                         wc_ref, bc_ref,
                         out_ref,
                         g0_scr):
    """Single invocation: whole sequence resident in VMEM, recurrence as an
    unrolled in-kernel loop.  Shapes (padded by the wrapper):
      x_ref    (T*BP, FP)     time-major, batch-padded, flattened
      wih0_ref (FP, GP)       b0_ref (1, GP)       layer-0 input projection
      whh0_ref (H,  GP)                            layer-0 recurrence
      w1_ref   (2H, GP)       b1_ref (1, GP)       fused layer-1 [wih1; whh1]
      wc_ref   (H,  CP)       bc_ref (1, CP)       classifier head
      out_ref  (BP, CP)
      g0_scr   (T*BP, GP)     scratch: hoisted layer-0 projection
    GP >= 4*H (== 128 when H == 32): the 4 gate blocks are static lane slabs of
    one vreg; pad gate lanes carry zero weights/biases so they stay inert.
    """
    BP = out_ref.shape[0]
    H = whh0_ref.shape[0]
    GP = whh0_ref.shape[1]
    T = x_ref.shape[0] // BP

    # ---- prologue: layer-0 input projection for ALL timesteps, one matmul ----
    g0_scr[...] = (jnp.dot(x_ref[...], wih0_ref[...],
                           preferred_element_type=jnp.float32)
                   + b0_ref[...])

    # ---- hoisted loads / broadcasts (kept out of the unrolled recurrence) ----
    whh0 = whh0_ref[...]
    w1 = w1_ref[...]
    b1 = jnp.broadcast_to(b1_ref[...], (BP, GP))

    def gate_update(gates, c):
        # gates: (BP, GP), PyTorch gate order i, f, g, o in lanes [0, 4H).
        # sigmoid via the exact identity 0.5*(1 + tanh(x/2)): ONE EUP push over
        # the whole gates vreg instead of exp + reciprocal per sigmoid gate.
        sig = 0.5 * (1.0 + jnp.tanh(0.5 * gates))
        i = sig[:, 0 * H:1 * H]
        f = sig[:, 1 * H:2 * H]
        o = sig[:, 3 * H:4 * H]
        g = jnp.tanh(gates[:, 2 * H:3 * H])
        c_new = f * c + i * g
        h_new = o * jnp.tanh(c_new)
        return h_new, c_new

    def step(t, carry):
        h0, c0, h1, c1 = carry
        row = pl.multiple_of(t * BP, BP)
        # layer 0: input projection precomputed; only the recurrent matmul here.
        g0 = g0_scr[pl.ds(row, BP), :] + jnp.dot(
            h0, whh0, preferred_element_type=jnp.float32)
        h0, c0 = gate_update(g0, c0)
        # layer 1: single fused matmul on the lane-concat [h0_new | h1_prev].
        h01 = jnp.concatenate([h0, h1], axis=1)
        g1 = jnp.dot(h01, w1, preferred_element_type=jnp.float32) + b1
        h1, c1 = gate_update(g1, c1)
        return h0, c0, h1, c1

    # NOTE: padded batch rows (x == 0) still develop non-zero h/c (gates == bias,
    # sigmoid(bias) != 0).  Rows are fully independent and sliced off by the
    # wrapper, so this is harmless -- but never add a cross-row reduction here.
    zeros = jnp.zeros((BP, H), jnp.float32)
    h0, c0, h1, c1 = jax.lax.fori_loop(
        0, T, step, (zeros, zeros, zeros, zeros), unroll=True)

    # ---- epilogue: classifier head on the last top-layer hidden state ----
    out_ref[...] = (jnp.dot(h1, wc_ref[...], preferred_element_type=jnp.float32)
                    + bc_ref[...])


def _round_up(n, m):
    return ((n + m - 1) // m) * m


def make_rnn_classify(params):
    """Pads / fuses the weights ONCE and returns a jitted forward(x) -> (B, C).

    params: (wih0 (F,4H), whh0 (H,4H), b0 (1,4H),
             wih1 (H,4H), whh1 (H,4H), b1 (1,4H),
             wc (H,C), bc (1,C))  -- pre-transposed for (B,K)@(K,N); biases = b_ih + b_hh.
    """
    wih0, whh0, b0, wih1, whh1, b1, wc, bc = params
    F = wih0.shape[0]
    H = whh0.shape[0]
    C = wc.shape[1]
    G = 4 * H

    GP = max(128, _round_up(G, 128))   # gate width: one (or more) full lane vreg
    FP = max(8, _round_up(F, 8))       # prologue contraction dim -> full sublane tile
    CP = max(128, _round_up(C, 128))   # lane-dense output store

    f32 = jnp.float32
    # ---- one-time weight padding / fusion (hoisted out of the per-call path) ----
    wih0_p = jnp.pad(wih0.astype(f32), ((0, FP - F), (0, GP - G)))   # (FP, GP)
    b0_p = jnp.pad(b0.astype(f32), ((0, 0), (0, GP - G)))            # (1, GP)
    whh0_p = jnp.pad(whh0.astype(f32), ((0, 0), (0, GP - G)))        # (H, GP)
    # Fused layer-1 weight [wih1; whh1]: the step does ONE matmul for layer 1.
    w1_p = jnp.pad(jnp.concatenate([wih1, whh1], axis=0).astype(f32),
                   ((0, 0), (0, GP - G)))                            # (2H, GP)
    b1_p = jnp.pad(b1.astype(f32), ((0, 0), (0, GP - G)))            # (1, GP)
    wc_p = jnp.pad(wc.astype(f32), ((0, 0), (0, CP - C)))            # (H, CP)
    bc_p = jnp.pad(bc.astype(f32), ((0, 0), (0, CP - C)))            # (1, CP)

    # TODO(synk): if B or H ever scale up, (a) add a batch grid axis with
    # dimension_semantics=("parallel",) so v7x's second TensorCore is used and
    # size tiles against its 64 MiB VMEM, and (b) consider bf16 weight operands
    # (f32 accumulation) on v6e/v7x to cut MXU passes -- re-validate tolerances.

    @jax.jit
    def forward(x):
        B = x.shape[0]
        T = x.shape[-1]
        BP = max(8, _round_up(B, 8))

        # Glue (fused under jit): squeeze + permute(2,0,1): (B,1,F,T) -> (T,B,F),
        # pad batch -> BP and features -> FP, flatten to (T*BP, FP).
        x_seq = jnp.transpose(jnp.squeeze(x, axis=1), (2, 0, 1)).astype(f32)
        x_seq = jnp.pad(x_seq, ((0, 0), (0, BP - B), (0, FP - F)))
        x_flat = x_seq.reshape(T * BP, FP)

        # Gridless pallas_call: every operand is a full-array, single-buffered
        # VMEM resident; the whole forward runs in one kernel invocation
        # (~0.1 MiB VMEM total at these shapes).
        out_p = pl.pallas_call(
            lstm_classify_kernel,
            out_shape=jax.ShapeDtypeStruct((BP, CP), f32),
            scratch_shapes=[pltpu.VMEM((T * BP, GP), f32)],
        )(x_flat, wih0_p, b0_p, whh0_p, w1_p, b1_p, wc_p, bc_p)

        return out_p[:B, :C]

    return forward


def rnn_classify_ref(x, params):
    """Pure-JAX reference (lax.scan) for correctness checking."""
    wih0, whh0, b0, wih1, whh1, b1, wc, bc = params
    x_seq = jnp.transpose(jnp.squeeze(x, axis=1), (2, 0, 1)).astype(jnp.float32)
    T, B, F = x_seq.shape
    H = whh0.shape[0]

    def cell(x_in, h, c, wih, whh, b):
        gates = x_in @ wih + h @ whh + b
        i, f, g, o = jnp.split(gates, 4, axis=-1)
        c = jax.nn.sigmoid(f) * c + jax.nn.sigmoid(i) * jnp.tanh(g)
        h = jax.nn.sigmoid(o) * jnp.tanh(c)
        return h, c

    def step(carry, x_t):
        h0, c0, h1, c1 = carry
        h0, c0 = cell(x_t, h0, c0, wih0, whh0, b0)
        h1, c1 = cell(h0, h1, c1, wih1, whh1, b1)
        return (h0, c0, h1, c1), None

    init = tuple(jnp.zeros((B, H), jnp.float32) for _ in range(4))
    (h0, c0, h1, c1), _ = jax.lax.scan(step, init, x_seq)
    return h1 @ wc + bc


if __name__ == "__main__":
    # Small shapes consistent with the module (hidden shrunk from 50 to 32 so
    # that 4*H == 128, one lane vreg of gates; in_feature generalized to 4).
    B, F, T = 2, 4, 8      # batch, in_feature, sequence length
    H, C = 32, 1           # hidden_feature, num_class

    key = jax.random.PRNGKey(0)
    keys = jax.random.split(key, 11)

    def u(k, shape, bound):
        return jax.random.uniform(k, shape, jnp.float32, -bound, bound)

    kb = 1.0 / (H ** 0.5)  # PyTorch LSTM / Linear init bound
    # layer 0 (input F -> hidden H), weights stored transposed for (B,K)@(K,N)
    wih0 = u(keys[0], (F, 4 * H), kb)
    whh0 = u(keys[1], (H, 4 * H), kb)
    b0 = u(keys[2], (1, 4 * H), kb) + u(keys[3], (1, 4 * H), kb)  # b_ih + b_hh
    # layer 1 (hidden H -> hidden H)
    wih1 = u(keys[4], (H, 4 * H), kb)
    whh1 = u(keys[5], (H, 4 * H), kb)
    b1 = u(keys[6], (1, 4 * H), kb) + u(keys[7], (1, 4 * H), kb)
    # classifier Linear(H, C)
    wc = u(keys[8], (H, C), kb)
    bc = u(keys[9], (1, C), kb)
    params = (wih0, whh0, b0, wih1, whh1, b1, wc, bc)

    x = jax.random.normal(keys[10], (B, 1, F, T), jnp.float32)

    forward = make_rnn_classify(params)   # one-time weight padding / fusion
    out = jax.block_until_ready(forward(x))
    ref = jax.block_until_ready(rnn_classify_ref(x, params))

    assert out.shape == (B, C), out.shape
    # Tolerance absorbs f32 re-association from the hoisted/fused formulation
    # and the tanh-identity sigmoid.
    assert jnp.allclose(out, ref, atol=1e-4, rtol=1e-4), (out, ref)
    print("KERNEL_OK")
</pallas_src>

<mosaic_0001>
module attributes {stable_mosaic.version = 11 : i64} {
  func.func @lstm_classify_kernel(%arg0: memref<64x8xf32, #tpu.memory_space<vmem>>, %arg1: memref<8x128xf32, #tpu.memory_space<vmem>>, %arg2: memref<1x128xf32, #tpu.memory_space<vmem>>, %arg3: memref<32x128xf32, #tpu.memory_space<vmem>>, %arg4: memref<64x128xf32, #tpu.memory_space<vmem>>, %arg5: memref<1x128xf32, #tpu.memory_space<vmem>>, %arg6: memref<32x128xf32, #tpu.memory_space<vmem>>, %arg7: memref<1x128xf32, #tpu.memory_space<vmem>>, %arg8: memref<8x128xf32, #tpu.memory_space<vmem>>, %arg9: memref<64x128xf32, #tpu.memory_space<vmem>>) attributes {dimension_semantics = [], scalar_prefetch = 0 : i64, scratch_operands = 1 : i64, tpu.core_type = #tpu.core_type<tc>} {
    %c0 = arith.constant 0 : index
    %c0_0 = arith.constant 0 : index
    %0 = vector.load %arg0[%c0, %c0_0] : memref<64x8xf32, #tpu.memory_space<vmem>>, vector<64x8xf32>
    %c0_1 = arith.constant 0 : index
    %c0_2 = arith.constant 0 : index
    %1 = vector.load %arg1[%c0_1, %c0_2] : memref<8x128xf32, #tpu.memory_space<vmem>>, vector<8x128xf32>
    %cst = arith.constant dense<0.000000e+00> : vector<64x128xf32>
    %2 = tpu.matmul %0, %1, %cst {dimension_numbers = #tpu.dot_dimension_numbers<[1], [0], [0], [1], [0, 0, 1, 1], [], []>} : vector<64x8xf32>, vector<8x128xf32>, vector<64x128xf32> -> vector<64x128xf32>
    %c0_3 = arith.constant 0 : index
    %c0_4 = arith.constant 0 : index
    %3 = vector.load %arg2[%c0_3, %c0_4] : memref<1x128xf32, #tpu.memory_space<vmem>>, vector<1x128xf32>
    %4 = vector.broadcast %3 : vector<1x128xf32> to vector<64x128xf32>
    %5 = arith.addf %2, %4 : vector<64x128xf32>
    %c0_5 = arith.constant 0 : index
    %c0_6 = arith.constant 0 : index
    %6 = vector.load %arg9[%c0_5, %c0_6] : memref<64x128xf32, #tpu.memory_space<vmem>>, vector<64x128xf32>
    tpu.vector_store %arg9[%c0_5, %c0_6], %5 {strides = array<i32>} : memref<64x128xf32, #tpu.memory_space<vmem>>, vector<64x128xf32>,
    %c0_7 = arith.constant 0 : index
    %c0_8 = arith.constant 0 : index
    %7 = vector.load %arg3[%c0_7, %c0_8] : memref<32x128xf32, #tpu.memory_space<vmem>>, vector<32x128xf32>
    %c0_9 = arith.constant 0 : index
    %c0_10 = arith.constant 0 : index
    %8 = vector.load %arg4[%c0_9, %c0_10] : memref<64x128xf32, #tpu.memory_space<vmem>>, vector<64x128xf32>
    %c0_11 = arith.constant 0 : index
    %c0_12 = arith.constant 0 : index
    %9 = vector.load %arg5[%c0_11, %c0_12] : memref<1x128xf32, #tpu.memory_space<vmem>>, vector<1x128xf32>
    %10 = vector.shape_cast %9 : vector<1x128xf32> to vector<1x128xf32>
    %11 = vector.broadcast %10 : vector<1x128xf32> to vector<8x128xf32>
    %cst_13 = arith.constant 0.000000e+00 : f32
    %12 = vector.broadcast %cst_13 : f32 to vector<8x32xf32>
    %c0_i32 = arith.constant 0 : i32
    %c8_i32 = arith.constant 8 : i32
    %13 = arith.muli %c0_i32, %c8_i32 : i32
    %14 = tpu.assume_multiple %13, 8 : i32
    %15 = arith.index_cast %14 : i32 to index
    %c0_14 = arith.constant 0 : index
    %16 = vector.load %arg9[%15, %c0_14] : memref<64x128xf32, #tpu.memory_space<vmem>>, vector<8x128xf32>
    %cst_15 = arith.constant dense<0.000000e+00> : vector<8x128xf32>
    %17 = tpu.matmul %12, %7, %cst_15 {dimension_numbers = #tpu.dot_dimension_numbers<[1], [0], [0], [1], [0, 0, 1, 1], [], []>} : vector<8x32xf32>, vector<32x128xf32>, vector<8x128xf32> -> vector<8x128xf32>
    %18 = arith.addf %16, %17 : vector<8x128xf32>
    %cst_16 = arith.constant 5.000000e-01 : f32
    %19 = vector.broadcast %cst_16 : f32 to vector<8x128xf32>
    %20 = arith.mulf %19, %18 : vector<8x128xf32>
    %21 = math.tanh %20 : vector<8x128xf32>
    %cst_17 = arith.constant 1.000000e+00 : f32
    %22 = vector.broadcast %cst_17 : f32 to vector<8x128xf32>
    %23 = arith.addf %22, %21 : vector<8x128xf32>
    %cst_18 = arith.constant 5.000000e-01 : f32
    %24 = vector.broadcast %cst_18 : f32 to vector<8x128xf32>
    %25 = arith.mulf %24, %23 : vector<8x128xf32>
    %26 = vector.extract_strided_slice %25 {offsets = [0, 0], sizes = [8, 32], strides = [1, 1]} : vector<8x128xf32> to vector<8x32xf32>
    %27 = vector.extract_strided_slice %25 {offsets = [0, 32], sizes = [8, 32], strides = [1, 1]} : vector<8x128xf32> to vector<8x32xf32>
    %28 = vector.extract_strided_slice %25 {offsets = [0, 96], sizes = [8, 32], strides = [1, 1]} : vector<8x128xf32> to vector<8x32xf32>
    %29 = vector.extract_strided_slice %18 {offsets = [0, 64], sizes = [8, 32], strides = [1, 1]} : vector<8x128xf32> to vector<8x32xf32>
    %30 = math.tanh %29 : vector<8x32xf32>
    %31 = arith.mulf %27, %12 : vector<8x32xf32>
    %32 = arith.mulf %26, %30 : vector<8x32xf32>
    %33 = arith.addf %31, %32 : vector<8x32xf32>
    %34 = math.tanh %33 : vector<8x32xf32>
    %35 = arith.mulf %28, %34 : vector<8x32xf32>
    %36 = tpu.concatenate %35, %12 in 1 : vector<8x32xf32>, vector<8x32xf32> -> vector<8x64xf32>
    %cst_19 = arith.constant dense<0.000000e+00> : vector<8x128xf32>
    %37 = tpu.matmul %36, %8, %cst_19 {dimension_numbers = #tpu.dot_dimension_numbers<[1], [0], [0], [1], [0, 0, 1, 1], [], []>} : vector<8x64xf32>, vector<64x128xf32>, vector<8x128xf32> -> vector<8x128xf32>
    %38 = arith.addf %37, %11 : vector<8x128xf32>
    %cst_20 = arith.constant 5.000000e-01 : f32
    %39 = vector.broadcast %cst_20 : f32 to vector<8x128xf32>
    %40 = arith.mulf %39, %38 : vector<8x128xf32>
    %41 = math.tanh %40 : vector<8x128xf32>
    %cst_21 = arith.constant 1.000000e+00 : f32
    %42 = vector.broadcast %cst_21 : f32 to vector<8x128xf32>
    %43 = arith.addf %42, %41 : vector<8x128xf32>
    %cst_22 = arith.constant 5.000000e-01 : f32
    %44 = vector.broadcast %cst_22 : f32 to vector<8x128xf32>
    %45 = arith.mulf %44, %43 : vector<8x128xf32>
    %46 = vector.extract_strided_slice %45 {offsets = [0, 0], sizes = [8, 32], strides = [1, 1]} : vector<8x128xf32> to vector<8x32xf32>
    %47 = vector.extract_strided_slice %45 {offsets = [0, 32], sizes = [8, 32], strides = [1, 1]} : vector<8x128xf32> to vector<8x32xf32>
    %48 = vector.extract_strided_slice %45 {offsets = [0, 96], sizes = [8, 32], strides = [1, 1]} : vector<8x128xf32> to vector<8x32xf32>
    %49 = vector.extract_strided_slice %38 {offsets = [0, 64], sizes = [8, 32], strides = [1, 1]} : vector<8x128xf32> to vector<8x32xf32>
    %50 = math.tanh %49 : vector<8x32xf32>
    %51 = arith.mulf %47, %12 : vector<8x32xf32>
    %52 = arith.mulf %46, %50 : vector<8x32xf32>
    %53 = arith.addf %51, %52 : vector<8x32xf32>
    %54 = math.tanh %53 : vector<8x32xf32>
    %55 = arith.mulf %48, %54 : vector<8x32xf32>
    %c1_i32 = arith.constant 1 : i32
    %c8_i32_23 = arith.constant 8 : i32
    %56 = arith.muli %c1_i32, %c8_i32_23 : i32
    %57 = tpu.assume_multiple %56, 8 : i32
    %58 = arith.index_cast %57 : i32 to index
    %c0_24 = arith.constant 0 : index
    %59 = vector.load %arg9[%58, %c0_24] : memref<64x128xf32, #tpu.memory_space<vmem>>, vector<8x128xf32>
    %cst_25 = arith.constant dense<0.000000e+00> : vector<8x128xf32>
    %60 = tpu.matmul %35, %7, %cst_25 {dimension_numbers = #tpu.dot_dimension_numbers<[1], [0], [0], [1], [0, 0, 1, 1], [], []>} : vector<8x32xf32>, vector<32x128xf32>, vector<8x128xf32> -> vector<8x128xf32>
    %61 = arith.addf %59, %60 : vector<8x128xf32>
    %cst_26 = arith.constant 5.000000e-01 : f32
    %62 = vector.broadcast %cst_26 : f32 to vector<8x128xf32>
    %63 = arith.mulf %62, %61 : vector<8x128xf32>
    %64 = math.tanh %63 : vector<8x128xf32>
    %cst_27 = arith.constant 1.000000e+00 : f32
    %65 = vector.broadcast %cst_27 : f32 to vector<8x128xf32>
    %66 = arith.addf %65, %64 : vector<8x128xf32>
    %cst_28 = arith.constant 5.000000e-01 : f32
    %67 = vector.broadcast %cst_28 : f32 to vector<8x128xf32>
    %68 = arith.mulf %67, %66 : vector<8x128xf32>
    %69 = vector.extract_strided_slice %68 {offsets = [0, 0], sizes = [8, 32], strides = [1, 1]} : vector<8x128xf32> to vector<8x32xf32>
    %70 = vector.extract_strided_slice %68 {offsets = [0, 32], sizes = [8, 32], strides = [1, 1]} : vector<8x128xf32> to vector<8x32xf32>
    %71 = vector.extract_strided_slice %68 {offsets = [0, 96], sizes = [8, 32], strides = [1, 1]} : vector<8x128xf32> to vector<8x32xf32>
    %72 = vector.extract_strided_slice %61 {offsets = [0, 64], sizes = [8, 32], strides = [1, 1]} : vector<8x128xf32> to vector<8x32xf32>
    %73 = math.tanh %72 : vector<8x32xf32>
    %74 = arith.mulf %70, %33 : vector<8x32xf32>
    %75 = arith.mulf %69, %73 : vector<8x32xf32>
    %76 = arith.addf %74, %75 : vector<8x32xf32>
    %77 = math.tanh %76 : vector<8x32xf32>
    %78 = arith.mulf %71, %77 : vector<8x32xf32>
    %79 = tpu.concatenate %78, %55 in 1 : vector<8x32xf32>, vector<8x32xf32> -> vector<8x64xf32>
    %cst_29 = arith.constant dense<0.000000e+00> : vector<8x128xf32>
    %80 = tpu.matmul %79, %8, %cst_29 {dimension_numbers = #tpu.dot_dimension_numbers<[1], [0], [0], [1], [0, 0, 1, 1], [], []>} : vector<8x64xf32>, vector<64x128xf32>, vector<8x128xf32> -> vector<8x128xf32>
    %81 = arith.addf %80, %11 : vector<8x128xf32>
    %cst_30 = arith.constant 5.000000e-01 : f32
    %82 = vector.broadcast %cst_30 : f32 to vector<8x128xf32>
    %83 = arith.mulf %82, %81 : vector<8x128xf32>
    %84 = math.tanh %83 : vector<8x128xf32>
    %cst_31 = arith.constant 1.000000e+00 : f32
    %85 = vector.broadcast %cst_31 : f32 to vector<8x128xf32>
    %86 = arith.addf %85, %84 : vector<8x128xf32>
    %cst_32 = arith.constant 5.000000e-01 : f32
    %87 = vector.broadcast %cst_32 : f32 to vector<8x128xf32>
    %88 = arith.mulf %87, %86 : vector<8x128xf32>
    %89 = vector.extract_strided_slice %88 {offsets = [0, 0], sizes = [8, 32], strides = [1, 1]} : vector<8x128xf32> to vector<8x32xf32>
    %90 = vector.extract_strided_slice %88 {offsets = [0, 32], sizes = [8, 32], strides = [1, 1]} : vector<8x128xf32> to vector<8x32xf32>
    %91 = vector.extract_strided_slice %88 {offsets = [0, 96], sizes = [8, 32], strides = [1, 1]} : vector<8x128xf32> to vector<8x32xf32>
    %92 = vector.extract_strided_slice %81 {offsets = [0, 64], sizes = [8, 32], strides = [1, 1]} : vector<8x128xf32> to vector<8x32xf32>
    %93 = math.tanh %92 : vector<8x32xf32>
    %94 = arith.mulf %90, %53 : vector<8x32xf32>
    %95 = arith.mulf %89, %93 : vector<8x32xf32>
    %96 = arith.addf %94, %95 : vector<8x32xf32>
    %97 = math.tanh %96 : vector<8x32xf32>
    %98 = arith.mulf %91, %97 : vector<8x32xf32>
    %c2_i32 = arith.constant 2 : i32
    %c8_i32_33 = arith.constant 8 : i32
    %99 = arith.muli %c2_i32, %c8_i32_33 : i32
    %100 = tpu.assume_multiple %99, 8 : i32
    %101 = arith.index_cast %100 : i32 to index
    %c0_34 = arith.constant 0 : index
    %102 = vector.load %arg9[%101, %c0_34] : memref<64x128xf32, #tpu.memory_space<vmem>>, vector<8x128xf32>
    %cst_35 = arith.constant dense<0.000000e+00> : vector<8x128xf32>
    %103 = tpu.matmul %78, %7, %cst_35 {dimension_numbers = #tpu.dot_dimension_numbers<[1], [0], [0], [1], [0, 0, 1, 1], [], []>} : vector<8x32xf32>, vector<32x128xf32>, vector<8x128xf32> -> vector<8x128xf32>
    %104 = arith.addf %102, %103 : vector<8x128xf32>
    %cst_36 = arith.constant 5.000000e-01 : f32
    %105 = vector.broadcast %cst_36 : f32 to vector<8x128xf32>
    %106 = arith.mulf %105, %104 : vector<8x128xf32>
    %107 = math.tanh %106 : vector<8x128xf32>
    %cst_37 = arith.constant 1.000000e+00 : f32
    %108 = vector.broadcast %cst_37 : f32 to vector<8x128xf32>
    %109 = arith.addf %108, %107 : vector<8x128xf32>
    %cst_38 = arith.constant 5.000000e-01 : f32
    %110 = vector.broadcast %cst_38 : f32 to vector<8x128xf32>
    %111 = arith.mulf %110, %109 : vector<8x128xf32>
    %112 = vector.extract_strided_slice %111 {offsets = [0, 0], sizes = [8, 32], strides = [1, 1]} : vector<8x128xf32> to vector<8x32xf32>
    %113 = vector.extract_strided_slice %111 {offsets = [0, 32], sizes = [8, 32], strides = [1, 1]} : vector<8x128xf32> to vector<8x32xf32>
    %114 = vector.extract_strided_slice %111 {offsets = [0, 96], sizes = [8, 32], strides = [1, 1]} : vector<8x128xf32> to vector<8x32xf32>
    %115 = vector.extract_strided_slice %104 {offsets = [0, 64], sizes = [8, 32], strides = [1, 1]} : vector<8x128xf32> to vector<8x32xf32>
    %116 = math.tanh %115 : vector<8x32xf32>
    %117 = arith.mulf %113, %76 : vector<8x32xf32>
    %118 = arith.mulf %112, %116 : vector<8x32xf32>
    %119 = arith.addf %117, %118 : vector<8x32xf32>
    %120 = math.tanh %119 : vector<8x32xf32>
    %121 = arith.mulf %114, %120 : vector<8x32xf32>
    %122 = tpu.concatenate %121, %98 in 1 : vector<8x32xf32>, vector<8x32xf32> -> vector<8x64xf32>
    %cst_39 = arith.constant dense<0.000000e+00> : vector<8x128xf32>
    %123 = tpu.matmul %122, %8, %cst_39 {dimension_numbers = #tpu.dot_dimension_numbers<[1], [0], [0], [1], [0, 0, 1, 1], [], []>} : vector<8x64xf32>, vector<64x128xf32>, vector<8x128xf32> -> vector<8x128xf32>
    %124 = arith.addf %123, %11 : vector<8x128xf32>
    %cst_40 = arith.constant 5.000000e-01 : f32
    %125 = vector.broadcast %cst_40 : f32 to vector<8x128xf32>
    %126 = arith.mulf %125, %124 : vector<8x128xf32>
    %127 = math.tanh %126 : vector<8x128xf32>
    %cst_41 = arith.constant 1.000000e+00 : f32
    %128 = vector.broadcast %cst_41 : f32 to vector<8x128xf32>
    %129 = arith.addf %128, %127 : vector<8x128xf32>
    %cst_42 = arith.constant 5.000000e-01 : f32
    %130 = vector.broadcast %cst_42 : f32 to vector<8x128xf32>
    %131 = arith.mulf %130, %129 : vector<8x128xf32>
    %132 = vector.extract_strided_slice %131 {offsets = [0, 0], sizes = [8, 32], strides = [1, 1]} : vector<8x128xf32> to vector<8x32xf32>
    %133 = vector.extract_strided_slice %131 {offsets = [0, 32], sizes = [8, 32], strides = [1, 1]} : vector<8x128xf32> to vector<8x32xf32>
    %134 = vector.extract_strided_slice %131 {offsets = [0, 96], sizes = [8, 32], strides = [1, 1]} : vector<8x128xf32> to vector<8x32xf32>
    %135 = vector.extract_strided_slice %124 {offsets = [0, 64], sizes = [8, 32], strides = [1, 1]} : vector<8x128xf32> to vector<8x32xf32>
    %136 = math.tanh %135 : vector<8x32xf32>
    %137 = arith.mulf %133, %96 : vector<8x32xf32>
    %138 = arith.mulf %132, %136 : vector<8x32xf32>
    %139 = arith.addf %137, %138 : vector<8x32xf32>
    %140 = math.tanh %139 : vector<8x32xf32>
    %141 = arith.mulf %134, %140 : vector<8x32xf32>
    %c3_i32 = arith.constant 3 : i32
    %c8_i32_43 = arith.constant 8 : i32
    %142 = arith.muli %c3_i32, %c8_i32_43 : i32
    %143 = tpu.assume_multiple %142, 8 : i32
    %144 = arith.index_cast %143 : i32 to index
    %c0_44 = arith.constant 0 : index
    %145 = vector.load %arg9[%144, %c0_44] : memref<64x128xf32, #tpu.memory_space<vmem>>, vector<8x128xf32>
    %cst_45 = arith.constant dense<0.000000e+00> : vector<8x128xf32>
    %146 = tpu.matmul %121, %7, %cst_45 {dimension_numbers = #tpu.dot_dimension_numbers<[1], [0], [0], [1], [0, 0, 1, 1], [], []>} : vector<8x32xf32>, vector<32x128xf32>, vector<8x128xf32> -> vector<8x128xf32>
    %147 = arith.addf %145, %146 : vector<8x128xf32>
    %cst_46 = arith.constant 5.000000e-01 : f32
    %148 = vector.broadcast %cst_46 : f32 to vector<8x128xf32>
    %149 = arith.mulf %148, %147 : vector<8x128xf32>
    %150 = math.tanh %149 : vector<8x128xf32>
    %cst_47 = arith.constant 1.000000e+00 : f32
    %151 = vector.broadcast %cst_47 : f32 to vector<8x128xf32>
    %152 = arith.addf %151, %150 : vector<8x128xf32>
    %cst_48 = arith.constant 5.000000e-01 : f32
    %153 = vector.broadcast %cst_48 : f32 to vector<8x128xf32>
    %154 = arith.mulf %153, %152 : vector<8x128xf32>
    %155 = vector.extract_strided_slice %154 {offsets = [0, 0], sizes = [8, 32], strides = [1, 1]} : vector<8x128xf32> to vector<8x32xf32>
    %156 = vector.extract_strided_slice %154 {offsets = [0, 32], sizes = [8, 32], strides = [1, 1]} : vector<8x128xf32> to vector<8x32xf32>
    %157 = vector.extract_strided_slice %154 {offsets = [0, 96], sizes = [8, 32], strides = [1, 1]} : vector<8x128xf32> to vector<8x32xf32>
    %158 = vector.extract_strided_slice %147 {offsets = [0, 64], sizes = [8, 32], strides = [1, 1]} : vector<8x128xf32> to vector<8x32xf32>
    %159 = math.tanh %158 : vector<8x32xf32>
    %160 = arith.mulf %156, %119 : vector<8x32xf32>
    %161 = arith.mulf %155, %159 : vector<8x32xf32>
    %162 = arith.addf %160, %161 : vector<8x32xf32>
    %163 = math.tanh %162 : vector<8x32xf32>
    %164 = arith.mulf %157, %163 : vector<8x32xf32>
    %165 = tpu.concatenate %164, %141 in 1 : vector<8x32xf32>, vector<8x32xf32> -> vector<8x64xf32>
    %cst_49 = arith.constant dense<0.000000e+00> : vector<8x128xf32>
    %166 = tpu.matmul %165, %8, %cst_49 {dimension_numbers = #tpu.dot_dimension_numbers<[1], [0], [0], [1], [0, 0, 1, 1], [], []>} : vector<8x64xf32>, vector<64x128xf32>, vector<8x128xf32> -> vector<8x128xf32>
    %167 = arith.addf %166, %11 : vector<8x128xf32>
    %cst_50 = arith.constant 5.000000e-01 : f32
    %168 = vector.broadcast %cst_50 : f32 to vector<8x128xf32>
    %169 = arith.mulf %168, %167 : vector<8x128xf32>
    %170 = math.tanh %169 : vector<8x128xf32>
    %cst_51 = arith.constant 1.000000e+00 : f32
    %171 = vector.broadcast %cst_51 : f32 to vector<8x128xf32>
    %172 = arith.addf %171, %170 : vector<8x128xf32>
    %cst_52 = arith.constant 5.000000e-01 : f32
    %173 = vector.broadcast %cst_52 : f32 to vector<8x128xf32>
    %174 = arith.mulf %173, %172 : vector<8x128xf32>
    %175 = vector.extract_strided_slice %174 {offsets = [0, 0], sizes = [8, 32], strides = [1, 1]} : vector<8x128xf32> to vector<8x32xf32>
    %176 = vector.extract_strided_slice %174 {offsets = [0, 32], sizes = [8, 32], strides = [1, 1]} : vector<8x128xf32> to vector<8x32xf32>
    %177 = vector.extract_strided_slice %174 {offsets = [0, 96], sizes = [8, 32], strides = [1, 1]} : vector<8x128xf32> to vector<8x32xf32>
    %178 = vector.extract_strided_slice %167 {offsets = [0, 64], sizes = [8, 32], strides = [1, 1]} : vector<8x128xf32> to vector<8x32xf32>
    %179 = math.tanh %178 : vector<8x32xf32>
    %180 = arith.mulf %176, %139 : vector<8x32xf32>
    %181 = arith.mulf %175, %179 : vector<8x32xf32>
    %182 = arith.addf %180, %181 : vector<8x32xf32>
    %183 = math.tanh %182 : vector<8x32xf32>
    %184 = arith.mulf %177, %183 : vector<8x32xf32>
    %c4_i32 = arith.constant 4 : i32
    %c8_i32_53 = arith.constant 8 : i32
    %185 = arith.muli %c4_i32, %c8_i32_53 : i32
    %186 = tpu.assume_multiple %185, 8 : i32
    %187 = arith.index_cast %186 : i32 to index
    %c0_54 = arith.constant 0 : index
    %188 = vector.load %arg9[%187, %c0_54] : memref<64x128xf32, #tpu.memory_space<vmem>>, vector<8x128xf32>
    %cst_55 = arith.constant dense<0.000000e+00> : vector<8x128xf32>
    %189 = tpu.matmul %164, %7, %cst_55 {dimension_numbers = #tpu.dot_dimension_numbers<[1], [0], [0], [1], [0, 0, 1, 1], [], []>} : vector<8x32xf32>, vector<32x128xf32>, vector<8x128xf32> -> vector<8x128xf32>
    %190 = arith.addf %188, %189 : vector<8x128xf32>
    %cst_56 = arith.constant 5.000000e-01 : f32
    %191 = vector.broadcast %cst_56 : f32 to vector<8x128xf32>
    %192 = arith.mulf %191, %190 : vector<8x128xf32>
    %193 = math.tanh %192 : vector<8x128xf32>
    %cst_57 = arith.constant 1.000000e+00 : f32
    %194 = vector.broadcast %cst_57 : f32 to vector<8x128xf32>
    %195 = arith.addf %194, %193 : vector<8x128xf32>
    %cst_58 = arith.constant 5.000000e-01 : f32
    %196 = vector.broadcast %cst_58 : f32 to vector<8x128xf32>
    %197 = arith.mulf %196, %195 : vector<8x128xf32>
    %198 = vector.extract_strided_slice %197 {offsets = [0, 0], sizes = [8, 32], strides = [1, 1]} : vector<8x128xf32> to vector<8x32xf32>
    %199 = vector.extract_strided_slice %197 {offsets = [0, 32], sizes = [8, 32], strides = [1, 1]} : vector<8x128xf32> to vector<8x32xf32>
    %200 = vector.extract_strided_slice %197 {offsets = [0, 96], sizes = [8, 32], strides = [1, 1]} : vector<8x128xf32> to vector<8x32xf32>
    %201 = vector.extract_strided_slice %190 {offsets = [0, 64], sizes = [8, 32], strides = [1, 1]} : vector<8x128xf32> to vector<8x32xf32>
    %202 = math.tanh %201 : vector<8x32xf32>
    %203 = arith.mulf %199, %162 : vector<8x32xf32>
    %204 = arith.mulf %198, %202 : vector<8x32xf32>
    %205 = arith.addf %203, %204 : vector<8x32xf32>
    %206 = math.tanh %205 : vector<8x32xf32>
    %207 = arith.mulf %200, %206 : vector<8x32xf32>
    %208 = tpu.concatenate %207, %184 in 1 : vector<8x32xf32>, vector<8x32xf32> -> vector<8x64xf32>
    %cst_59 = arith.constant dense<0.000000e+00> : vector<8x128xf32>
    %209 = tpu.matmul %208, %8, %cst_59 {dimension_numbers = #tpu.dot_dimension_numbers<[1], [0], [0], [1], [0, 0, 1, 1], [], []>} : vector<8x64xf32>, vector<64x128xf32>, vector<8x128xf32> -> vector<8x128xf32>
    %210 = arith.addf %209, %11 : vector<8x128xf32>
    %cst_60 = arith.constant 5.000000e-01 : f32
    %211 = vector.broadcast %cst_60 : f32 to vector<8x128xf32>
    %212 = arith.mulf %211, %210 : vector<8x128xf32>
    %213 = math.tanh %212 : vector<8x128xf32>
    %cst_61 = arith.constant 1.000000e+00 : f32
    %214 = vector.broadcast %cst_61 : f32 to vector<8x128xf32>
    %215 = arith.addf %214, %213 : vector<8x128xf32>
    %cst_62 = arith.constant 5.000000e-01 : f32
    %216 = vector.broadcast %cst_62 : f32 to vector<8x128xf32>
    %217 = arith.mulf %216, %215 : vector<8x128xf32>
    %218 = vector.extract_strided_slice %217 {offsets = [0, 0], sizes = [8, 32], strides = [1, 1]} : vector<8x128xf32> to vector<8x32xf32>
    %219 = vector.extract_strided_slice %217 {offsets = [0, 32], sizes = [8, 32], strides = [1, 1]} : vector<8x128xf32> to vector<8x32xf32>
    %220 = vector.extract_strided_slice %217 {offsets = [0, 96], sizes = [8, 32], strides = [1, 1]} : vector<8x128xf32> to vector<8x32xf32>
    %221 = vector.extract_strided_slice %210 {offsets = [0, 64], sizes = [8, 32], strides = [1, 1]} : vector<8x128xf32> to vector<8x32xf32>
    %222 = math.tanh %221 : vector<8x32xf32>
    %223 = arith.mulf %219, %182 : vector<8x32xf32>
    %224 = arith.mulf %218, %222 : vector<8x32xf32>
    %225 = arith.addf %223, %224 : vector<8x32xf32>
    %226 = math.tanh %225 : vector<8x32xf32>
    %227 = arith.mulf %220, %226 : vector<8x32xf32>
    %c5_i32 = arith.constant 5 : i32
    %c8_i32_63 = arith.constant 8 : i32
    %228 = arith.muli %c5_i32, %c8_i32_63 : i32
    %229 = tpu.assume_multiple %228, 8 : i32
    %230 = arith.index_cast %229 : i32 to index
    %c0_64 = arith.constant 0 : index
    %231 = vector.load %arg9[%230, %c0_64] : memref<64x128xf32, #tpu.memory_space<vmem>>, vector<8x128xf32>
    %cst_65 = arith.constant dense<0.000000e+00> : vector<8x128xf32>
    %232 = tpu.matmul %207, %7, %cst_65 {dimension_numbers = #tpu.dot_dimension_numbers<[1], [0], [0], [1], [0, 0, 1, 1], [], []>} : vector<8x32xf32>, vector<32x128xf32>, vector<8x128xf32> -> vector<8x128xf32>
    %233 = arith.addf %231, %232 : vector<8x128xf32>
    %cst_66 = arith.constant 5.000000e-01 : f32
    %234 = vector.broadcast %cst_66 : f32 to vector<8x128xf32>
    %235 = arith.mulf %234, %233 : vector<8x128xf32>
    %236 = math.tanh %235 : vector<8x128xf32>
    %cst_67 = arith.constant 1.000000e+00 : f32
    %237 = vector.broadcast %cst_67 : f32 to vector<8x128xf32>
    %238 = arith.addf %237, %236 : vector<8x128xf32>
    %cst_68 = arith.constant 5.000000e-01 : f32
    %239 = vector.broadcast %cst_68 : f32 to vector<8x128xf32>
    %240 = arith.mulf %239, %238 : vector<8x128xf32>
    %241 = vector.extract_strided_slice %240 {offsets = [0, 0], sizes = [8, 32], strides = [1, 1]} : vector<8x128xf32> to vector<8x32xf32>
    %242 = vector.extract_strided_slice %240 {offsets = [0, 32], sizes = [8, 32], strides = [1, 1]} : vector<8x128xf32> to vector<8x32xf32>
    %243 = vector.extract_strided_slice %240 {offsets = [0, 96], sizes = [8, 32], strides = [1, 1]} : vector<8x128xf32> to vector<8x32xf32>
    %244 = vector.extract_strided_slice %233 {offsets = [0, 64], sizes = [8, 32], strides = [1, 1]} : vector<8x128xf32> to vector<8x32xf32>
    %245 = math.tanh %244 : vector<8x32xf32>
    %246 = arith.mulf %242, %205 : vector<8x32xf32>
    %247 = arith.mulf %241, %245 : vector<8x32xf32>
    %248 = arith.addf %246, %247 : vector<8x32xf32>
    %249 = math.tanh %248 : vector<8x32xf32>
    %250 = arith.mulf %243, %249 : vector<8x32xf32>
    %251 = tpu.concatenate %250, %227 in 1 : vector<8x32xf32>, vector<8x32xf32> -> vector<8x64xf32>
    %cst_69 = arith.constant dense<0.000000e+00> : vector<8x128xf32>
    %252 = tpu.matmul %251, %8, %cst_69 {dimension_numbers = #tpu.dot_dimension_numbers<[1], [0], [0], [1], [0, 0, 1, 1], [], []>} : vector<8x64xf32>, vector<64x128xf32>, vector<8x128xf32> -> vector<8x128xf32>
    %253 = arith.addf %252, %11 : vector<8x128xf32>
    %cst_70 = arith.constant 5.000000e-01 : f32
    %254 = vector.broadcast %cst_70 : f32 to vector<8x128xf32>
    %255 = arith.mulf %254, %253 : vector<8x128xf32>
    %256 = math.tanh %255 : vector<8x128xf32>
    %cst_71 = arith.constant 1.000000e+00 : f32
    %257 = vector.broadcast %cst_71 : f32 to vector<8x128xf32>
    %258 = arith.addf %257, %256 : vector<8x128xf32>
    %cst_72 = arith.constant 5.000000e-01 : f32
    %259 = vector.broadcast %cst_72 : f32 to vector<8x128xf32>
    %260 = arith.mulf %259, %258 : vector<8x128xf32>
    %261 = vector.extract_strided_slice %260 {offsets = [0, 0], sizes = [8, 32], strides = [1, 1]} : vector<8x128xf32> to vector<8x32xf32>
    %262 = vector.extract_strided_slice %260 {offsets = [0, 32], sizes = [8, 32], strides = [1, 1]} : vector<8x128xf32> to vector<8x32xf32>
    %263 = vector.extract_strided_slice %260 {offsets = [0, 96], sizes = [8, 32], strides = [1, 1]} : vector<8x128xf32> to vector<8x32xf32>
    %264 = vector.extract_strided_slice %253 {offsets = [0, 64], sizes = [8, 32], strides = [1, 1]} : vector<8x128xf32> to vector<8x32xf32>
    %265 = math.tanh %264 : vector<8x32xf32>
    %266 = arith.mulf %262, %225 : vector<8x32xf32>
    %267 = arith.mulf %261, %265 : vector<8x32xf32>
    %268 = arith.addf %266, %267 : vector<8x32xf32>
    %269 = math.tanh %268 : vector<8x32xf32>
    %270 = arith.mulf %263, %269 : vector<8x32xf32>
    %c6_i32 = arith.constant 6 : i32
    %c8_i32_73 = arith.constant 8 : i32
    %271 = arith.muli %c6_i32, %c8_i32_73 : i32
    %272 = tpu.assume_multiple %271, 8 : i32
    %273 = arith.index_cast %272 : i32 to index
    %c0_74 = arith.constant 0 : index
    %274 = vector.load %arg9[%273, %c0_74] : memref<64x128xf32, #tpu.memory_space<vmem>>, vector<8x128xf32>
    %cst_75 = arith.constant dense<0.000000e+00> : vector<8x128xf32>
    %275 = tpu.matmul %250, %7, %cst_75 {dimension_numbers = #tpu.dot_dimension_numbers<[1], [0], [0], [1], [0, 0, 1, 1], [], []>} : vector<8x32xf32>, vector<32x128xf32>, vector<8x128xf32> -> vector<8x128xf32>
    %276 = arith.addf %274, %275 : vector<8x128xf32>
    %cst_76 = arith.constant 5.000000e-01 : f32
    %277 = vector.broadcast %cst_76 : f32 to vector<8x128xf32>
    %278 = arith.mulf %277, %276 : vector<8x128xf32>
    %279 = math.tanh %278 : vector<8x128xf32>
    %cst_77 = arith.constant 1.000000e+00 : f32
    %280 = vector.broadcast %cst_77 : f32 to vector<8x128xf32>
    %281 = arith.addf %280, %279 : vector<8x128xf32>
    %cst_78 = arith.constant 5.000000e-01 : f32
    %282 = vector.broadcast %cst_78 : f32 to vector<8x128xf32>
    %283 = arith.mulf %282, %281 : vector<8x128xf32>
    %284 = vector.extract_strided_slice %283 {offsets = [0, 0], sizes = [8, 32], strides = [1, 1]} : vector<8x128xf32> to vector<8x32xf32>
    %285 = vector.extract_strided_slice %283 {offsets = [0, 32], sizes = [8, 32], strides = [1, 1]} : vector<8x128xf32> to vector<8x32xf32>
    %286 = vector.extract_strided_slice %283 {offsets = [0, 96], sizes = [8, 32], strides = [1, 1]} : vector<8x128xf32> to vector<8x32xf32>
    %287 = vector.extract_strided_slice %276 {offsets = [0, 64], sizes = [8, 32], strides = [1, 1]} : vector<8x128xf32> to vector<8x32xf32>
    %288 = math.tanh %287 : vector<8x32xf32>
    %289 = arith.mulf %285, %248 : vector<8x32xf32>
    %290 = arith.mulf %284, %288 : vector<8x32xf32>
    %291 = arith.addf %289, %290 : vector<8x32xf32>
    %292 = math.tanh %291 : vector<8x32xf32>
    %293 = arith.mulf %286, %292 : vector<8x32xf32>
    %294 = tpu.concatenate %293, %270 in 1 : vector<8x32xf32>, vector<8x32xf32> -> vector<8x64xf32>
    %cst_79 = arith.constant dense<0.000000e+00> : vector<8x128xf32>
    %295 = tpu.matmul %294, %8, %cst_79 {dimension_numbers = #tpu.dot_dimension_numbers<[1], [0], [0], [1], [0, 0, 1, 1], [], []>} : vector<8x64xf32>, vector<64x128xf32>, vector<8x128xf32> -> vector<8x128xf32>
    %296 = arith.addf %295, %11 : vector<8x128xf32>
    %cst_80 = arith.constant 5.000000e-01 : f32
    %297 = vector.broadcast %cst_80 : f32 to vector<8x128xf32>
    %298 = arith.mulf %297, %296 : vector<8x128xf32>
    %299 = math.tanh %298 : vector<8x128xf32>
    %cst_81 = arith.constant 1.000000e+00 : f32
    %300 = vector.broadcast %cst_81 : f32 to vector<8x128xf32>
    %301 = arith.addf %300, %299 : vector<8x128xf32>
    %cst_82 = arith.constant 5.000000e-01 : f32
    %302 = vector.broadcast %cst_82 : f32 to vector<8x128xf32>
    %303 = arith.mulf %302, %301 : vector<8x128xf32>
    %304 = vector.extract_strided_slice %303 {offsets = [0, 0], sizes = [8, 32], strides = [1, 1]} : vector<8x128xf32> to vector<8x32xf32>
    %305 = vector.extract_strided_slice %303 {offsets = [0, 32], sizes = [8, 32], strides = [1, 1]} : vector<8x128xf32> to vector<8x32xf32>
    %306 = vector.extract_strided_slice %303 {offsets = [0, 96], sizes = [8, 32], strides = [1, 1]} : vector<8x128xf32> to vector<8x32xf32>
    %307 = vector.extract_strided_slice %296 {offsets = [0, 64], sizes = [8, 32], strides = [1, 1]} : vector<8x128xf32> to vector<8x32xf32>
    %308 = math.tanh %307 : vector<8x32xf32>
    %309 = arith.mulf %305, %268 : vector<8x32xf32>
    %310 = arith.mulf %304, %308 : vector<8x32xf32>
    %311 = arith.addf %309, %310 : vector<8x32xf32>
    %312 = math.tanh %311 : vector<8x32xf32>
    %313 = arith.mulf %306, %312 : vector<8x32xf32>
    %c7_i32 = arith.constant 7 : i32
    %c8_i32_83 = arith.constant 8 : i32
    %314 = arith.muli %c7_i32, %c8_i32_83 : i32
    %315 = tpu.assume_multiple %314, 8 : i32
    %316 = arith.index_cast %315 : i32 to index
    %c0_84 = arith.constant 0 : index
    %317 = vector.load %arg9[%316, %c0_84] : memref<64x128xf32, #tpu.memory_space<vmem>>, vector<8x128xf32>
    %cst_85 = arith.constant dense<0.000000e+00> : vector<8x128xf32>
    %318 = tpu.matmul %293, %7, %cst_85 {dimension_numbers = #tpu.dot_dimension_numbers<[1], [0], [0], [1], [0, 0, 1, 1], [], []>} : vector<8x32xf32>, vector<32x128xf32>, vector<8x128xf32> -> vector<8x128xf32>
    %319 = arith.addf %317, %318 : vector<8x128xf32>
    %cst_86 = arith.constant 5.000000e-01 : f32
    %320 = vector.broadcast %cst_86 : f32 to vector<8x128xf32>
    %321 = arith.mulf %320, %319 : vector<8x128xf32>
    %322 = math.tanh %321 : vector<8x128xf32>
    %cst_87 = arith.constant 1.000000e+00 : f32
    %323 = vector.broadcast %cst_87 : f32 to vector<8x128xf32>
    %324 = arith.addf %323, %322 : vector<8x128xf32>
    %cst_88 = arith.constant 5.000000e-01 : f32
    %325 = vector.broadcast %cst_88 : f32 to vector<8x128xf32>
    %326 = arith.mulf %325, %324 : vector<8x128xf32>
    %327 = vector.extract_strided_slice %326 {offsets = [0, 0], sizes = [8, 32], strides = [1, 1]} : vector<8x128xf32> to vector<8x32xf32>
    %328 = vector.extract_strided_slice %326 {offsets = [0, 32], sizes = [8, 32], strides = [1, 1]} : vector<8x128xf32> to vector<8x32xf32>
    %329 = vector.extract_strided_slice %326 {offsets = [0, 96], sizes = [8, 32], strides = [1, 1]} : vector<8x128xf32> to vector<8x32xf32>
    %330 = vector.extract_strided_slice %319 {offsets = [0, 64], sizes = [8, 32], strides = [1, 1]} : vector<8x128xf32> to vector<8x32xf32>
    %331 = math.tanh %330 : vector<8x32xf32>
    %332 = arith.mulf %328, %291 : vector<8x32xf32>
    %333 = arith.mulf %327, %331 : vector<8x32xf32>
    %334 = arith.addf %332, %333 : vector<8x32xf32>
    %335 = math.tanh %334 : vector<8x32xf32>
    %336 = arith.mulf %329, %335 : vector<8x32xf32>
    %337 = tpu.concatenate %336, %313 in 1 : vector<8x32xf32>, vector<8x32xf32> -> vector<8x64xf32>
    %cst_89 = arith.constant dense<0.000000e+00> : vector<8x128xf32>
    %338 = tpu.matmul %337, %8, %cst_89 {dimension_numbers = #tpu.dot_dimension_numbers<[1], [0], [0], [1], [0, 0, 1, 1], [], []>} : vector<8x64xf32>, vector<64x128xf32>, vector<8x128xf32> -> vector<8x128xf32>
    %339 = arith.addf %338, %11 : vector<8x128xf32>
    %cst_90 = arith.constant 5.000000e-01 : f32
    %340 = vector.broadcast %cst_90 : f32 to vector<8x128xf32>
    %341 = arith.mulf %340, %339 : vector<8x128xf32>
    %342 = math.tanh %341 : vector<8x128xf32>
    %cst_91 = arith.constant 1.000000e+00 : f32
    %343 = vector.broadcast %cst_91 : f32 to vector<8x128xf32>
    %344 = arith.addf %343, %342 : vector<8x128xf32>
    %cst_92 = arith.constant 5.000000e-01 : f32
    %345 = vector.broadcast %cst_92 : f32 to vector<8x128xf32>
    %346 = arith.mulf %345, %344 : vector<8x128xf32>
    %347 = vector.extract_strided_slice %346 {offsets = [0, 0], sizes = [8, 32], strides = [1, 1]} : vector<8x128xf32> to vector<8x32xf32>
    %348 = vector.extract_strided_slice %346 {offsets = [0, 32], sizes = [8, 32], strides = [1, 1]} : vector<8x128xf32> to vector<8x32xf32>
    %349 = vector.extract_strided_slice %346 {offsets = [0, 96], sizes = [8, 32], strides = [1, 1]} : vector<8x128xf32> to vector<8x32xf32>
    %350 = vector.extract_strided_slice %339 {offsets = [0, 64], sizes = [8, 32], strides = [1, 1]} : vector<8x128xf32> to vector<8x32xf32>
    %351 = math.tanh %350 : vector<8x32xf32>
    %352 = arith.mulf %348, %311 : vector<8x32xf32>
    %353 = arith.mulf %347, %351 : vector<8x32xf32>
    %354 = arith.addf %352, %353 : vector<8x32xf32>
    %355 = math.tanh %354 : vector<8x32xf32>
    %356 = arith.mulf %349, %355 : vector<8x32xf32>
    %c8_i32_93 = arith.constant 8 : i32
    %c0_94 = arith.constant 0 : index
    %c0_95 = arith.constant 0 : index
    %357 = vector.load %arg6[%c0_94, %c0_95] : memref<32x128xf32, #tpu.memory_space<vmem>>, vector<32x128xf32>
    %cst_96 = arith.constant dense<0.000000e+00> : vector<8x128xf32>
    %358 = tpu.matmul %356, %357, %cst_96 {dimension_numbers = #tpu.dot_dimension_numbers<[1], [0], [0], [1], [0, 0, 1, 1], [], []>} : vector<8x32xf32>, vector<32x128xf32>, vector<8x128xf32> -> vector<8x128xf32>
    %c0_97 = arith.constant 0 : index
    %c0_98 = arith.constant 0 : index
    %359 = vector.load %arg7[%c0_97, %c0_98] : memref<1x128xf32, #tpu.memory_space<vmem>>, vector<1x128xf32>
    %360 = vector.broadcast %359 : vector<1x128xf32> to vector<8x128xf32>
    %361 = arith.addf %358, %360 : vector<8x128xf32>
    %c0_99 = arith.constant 0 : index
    %c0_100 = arith.constant 0 : index
    %362 = vector.load %arg8[%c0_99, %c0_100] : memref<8x128xf32, #tpu.memory_space<vmem>>, vector<8x128xf32>
    tpu.vector_store %arg8[%c0_99, %c0_100], %361 {strides = array<i32>} : memref<8x128xf32, #tpu.memory_space<vmem>>, vector<8x128xf32>,
    return
  }
}

</mosaic_0001>

<bundles_post_ra>
// kernel: forward.1
= control target key start
LH: loop header
LB: loop body
LE: loop exit
PB: predicated region body
PF: predicated region fallthrough
CT: control target
= control target key end

     0   :  { %13 = vsyncpa [#allocation4], 0  ;;  %s2610_s27 = smov [#allocation3]   ;;  %s3076_s0 = inlined_call_operand.vmem [shape: f32[64,8], index: 0, kind: input, shape index: {}]   ;;  %s3077_s1 = inlined_call_operand.vmem [shape: f32[8,128], index: 1, kind: input, shape index: {}]   ;;  %s3078_s2 = inlined_call_operand.vmem [shape: f32[1,128], index: 2, kind: input, shape index: {}]   ;;  %s3079_s3 = inlined_call_operand.hbm [shape: f32[32,128], index: 3, kind: input, shape index: {}]   ;;  %s3080_s4 = inlined_call_operand.vmem [shape: f32[64,128], index: 4, kind: input, shape index: {}]   ;;  %s3081_s5 = inlined_call_operand.vmem [shape: f32[1,128], index: 5, kind: input, shape index: {}]   ;;  %s3082_s6 = inlined_call_operand.vmem [shape: f32[32,128], index: 6, kind: input, shape index: {}]   ;;  %s3083_s7 = inlined_call_operand.vmem [shape: f32[1,128], index: 7, kind: input, shape index: {}]   ;;  %s3084_s8 = inlined_call_operand.vmem [shape: f32[8,128], index: 8, kind: output, shape index: {}]  }
   0x1   :  { %s25_s28 = sshll.u32 %s2610_s27, 4  ;;  %s2586_s9 = scalar_lea.hbm %s3079_s3, 512  ;;  %s26_s28 = int_to_ptr.vmem [resolvable:$true] %s25_s28 }
   0x2   :  { %p2587_p0 = scmp.ne.s32.totalorder %s3079_s3, %s2586_s9  ;;  %p2590_p1 = scmp.lt.u32.totalorder %s2586_s9, %s3079_s3 }
   0x4   :  { %p2592_p2 = pnand %p2590_p1, %p2587_p0 }
   0x6   :  { %2595 = shalt.err (!%p2592_p2)
}
   0x7   :  { %s2596_s14 = scalar_lea.vmem %s26_s28, 512  ;;  %p2601_p4 = scmp.lt.s32.totalorder %s26_s28, %s26_s28 }
   0x8   :  { %p2597_p3 = scmp.ne.s32.totalorder %s26_s28, %s2596_s14  ;;  %p2602_p5 = scmp.lt.s32.totalorder %s2596_s14, %s2596_s14 }
   0xa   :  { %p2603_p6 = por %p2602_p5, %p2601_p4 }
   0xc   :  { %p2604_p7 = pnand %p2603_p6, %p2597_p3 }
   0xe   :  { %2607 = shalt.err (!%p2604_p7)
}
   0xf   :  { %s2611_s15 = smov 128   ;;  %s2612_s16 = smov 8  }
  0x10   :  { %31 = dma.hbm_to_vmem [thread:$0]  %s3079_s3, 512, %s26_s28, [#allocation4], %s2611_s15, %s2611_s15, %s2612_s16  }
  0x11   :  { %2608 = dma.done.wait [#allocation4], 512  }
  0x12   :  { %2609 = vsyncadd [#allocation4], 4294966784  ;;  %v2613_v0 = vmov 0.0|0.0   ;;  %vm2614_vm0 = vmmov 0   ;;  %v2615_v1 = vmov 0.0   ;;  %vm59_vm1 = vcmask 64512  }
  0x13   :  { %2332 = vmatprep.subr.bf16.mxu1 %v2613_v0  ;;  %2089 = vmatprep.mubr.msk.f32.mxu1 %vm2614_vm0, %v2615_v1  ;;  %v197_v2 = vld [vmem:[#allocation3] sm:$0xff]  ;;  %v198_v3 = vld [vmem:[#allocation3 + $0x8] sm:$0xff]  ;;  %v199_v8 = vld [vmem:[#allocation3 + $0x10] sm:$0xff]  ;;  %s2616_s25 = smov 64   ;;  %vm217_vm2 = vcmask 261120   ;;  %vm319_vm3 = vcmask 523264  }
  0x14   :  { %v51_v4 = vld [vmem:[%s3077_s1] sm:$0xff]  ;;  %v2681_v5 = vpack.c.bf16 %v198_v3, %v197_v2  ;;  %v44_v7 = vld [vmem:[%s3076_s0 + $0x8] sm:$0xff]  ;;  %v200_v9 = vld [vmem:[#allocation3 + $0x18] sm:$0xff] }
  0x15   :  { %2067 = vmatprep.subr.mxu0 %v51_v4  ;;  %v43_v6 = vld [vmem:[%s3076_s0] sm:$0xff]  ;;  %v2692_v10 = vpack.c.bf16 %v200_v9, %v199_v8  ;;  %v202_v29 = vld [vmem:[%s3080_s4 + $0x8] sm:$0xff]  ;;  %v45_v30 = vld [vmem:[%s3076_s0 + $0x10] sm:$0xff] }
  0x16   :  { %2068 = vmatpush3.msra.mxu0 %v51_v4  ;;  %2069 = vmatprep.mubr.msk.f32.mxu0 %vm59_vm1, %v43_v6  ;;  %v2710_v12 = vld [vmem:[%s3078_s2] ss:$0 sm:$0xff]  ;;  %s2617_s2 = smov 32   ;;  %v46_v32 = vld [vmem:[%s3076_s0 + $0x18] sm:$0xff]  ;;  %v203_v33 = vld [vmem:[%s3080_s4 + $0x10] sm:$0xff] }
  0x17   :  { %2334 = vmatpush3.bf16.msra.mxu1 %v2681_v5  ;;  %2070 = vmatmul.mubr.msk.f32.vlgmr.msra.gmra.mrb[0].mxu0 %vm59_vm1, %v44_v7  ;;  %v201_v28 = vld [vmem:[%s3080_s4] sm:$0xff]  ;;  %v204_v34 = vld [vmem:[%s3080_s4 + $0x18] sm:$0xff]  ;;  %v48_v37 = vld [vmem:[%s3076_s0 + $0x28] sm:$0xff] }
  0x18   :  { %2335 = vmatprep.subr.bf16.mxu1 %v2613_v0  ;;  %2338 = vmatprep.subr.bf16.mxu0 %v2613_v0  ;;  %v2727_v31 = vpack.c.bf16 %v202_v29, %v201_v28  ;;  %v47_v35 = vld [vmem:[%s3076_s0 + $0x20] sm:$0xff]  ;;  %v2744_v36 = vpack.c.bf16 %v204_v34, %v203_v33  ;;  %v206_v39 = vld [vmem:[%s3080_s4 + $0x28] sm:$0xff]  ;;  %v49_v40 = vld [vmem:[%s3076_s0 + $0x30] sm:$0xff] }
  0x19   :  { %2072 = vmatprep.mubr.msk.f32.mxu0 %vm59_vm1, %v45_v30  ;;  %v205_v38 = vld [vmem:[%s3080_s4 + $0x20] sm:$0xff]  ;;  %v50_v42 = vld [vmem:[%s3076_s0 + $0x38] sm:$0xff]  ;;  %v207_v43 = vld [vmem:[%s3080_s4 + $0x30] sm:$0xff] }
  0x1a   :  { %2340 = vmatpush3.bf16.msra.mxu0 %v2727_v31  ;;  %v2762_v41 = vpack.c.bf16 %v206_v39, %v205_v38  ;;  %v208_v44 = vld [vmem:[%s3080_s4 + $0x38] sm:$0xff]  ;;  %v2822_v58 = vld [vmem:[%s3081_s5] ss:$0 sm:$0xff] }
  0x1b   :  { %2337 = vmatpush3.bf16.msra.mxu1 %v2692_v10  ;;  %2073 = vmatmul.mubr.msk.f32.gmra.mrb[2].mxu0 %vm59_vm1, %v46_v32  ;;  %v2778_v46 = vpack.c.bf16 %v208_v44, %v207_v43 }
  0x1c   :  { %2350 = vmatprep.subr.bf16.mxu1 %v2613_v0  ;;  %2075 = vmatprep.mubr.msk.f32.mxu0 %vm59_vm1, %v47_v35 }
  0x1d   :  { %2341 = vmatprep.subr.bf16.mxu0 %v2613_v0 }
  0x1e   :  { %2090 = vmatmul.mubr.f32.vlgmr.msra.gmra.mrb[0].mxu1 %v2615_v1  ;;  %2343 = vmatpush3.bf16.msra.mxu0 %v2744_v36 }
  0x1f   :  { %2352 = vmatpush3.bf16.msra.mxu1 %v2681_v5  ;;  %2119 = vmatprep.mubr.msk.f32.mxu1 %vm2614_vm0, %v2615_v1 }
  0x20   :  { %2353 = vmatprep.subr.bf16.mxu1 %v2613_v0  ;;  %2076 = vmatmul.mubr.msk.f32.gmra.mrb[4].mxu0 %vm59_vm1, %v48_v37 }
  0x21   :  { %2078 = vmatprep.mubr.msk.f32.mxu0 %vm59_vm1, %v49_v40  ;;  %2344 = vmatprep.subr.bf16.mxu0 %v2613_v0 }
  0x22   :  { %2346 = vmatpush3.bf16.msra.mxu0 %v2762_v41 }
  0x23   :  { %2355 = vmatpush3.bf16.msra.mxu1 %v2692_v10  ;;  %2347 = vmatprep.subr.bf16.mxu0 %v2613_v0 }
  0x24   :  { %2356 = vmatprep.subr.bf16.mxu1 %v2613_v0  ;;  %2079 = vmatmul.mubr.msk.f32.gmra.mrb[6].mxu0 %vm59_vm1, %v50_v42 }
  0x25   :  { %2108 = vmatprep.mubr.msk.f32.mxu0 %vm2614_vm0, %v2615_v1 }
  0x26   :  { %2349 = vmatpush3.bf16.msra.mxu0 %v2778_v46 }
  0x27   :  { %2368 = vmatprep.subr.bf16.mxu0 %v2613_v0 }
  0xea   :  { %v2705_v11 = vpop.f32.mrb[0].mxu0 }
  0xeb   :  { %v150_v13 = vpop.f32.mrb[1].mxu0  ;;  %v156_v57 = vadd.f32 %v2705_v11, %v2710_v12 }
  0xec   :  { %v151_v14 = vadd.f32 %v2710_v12, %v150_v13 }
  0xee   :  { %v2786_v49 = vpop.f32.mrb[2].mxu0 }
  0xef   :  { %v2788_v50 = vpop.f32.mrb[3].mxu0 }
  0xf0   :  { %v161_v37 = vadd.f32 %v2710_v12, %v2788_v50 }
  0xf1   :  { %v287_v15 = vpop.f32.mrb[0].mxu1 }
  0xf2   :  { %v291_v16 = vadd.f32 %v287_v15, %v151_v14  ;;  %v2091_v17 = vpop.f32.mrb[1].mxu1 }
  0xf3   :  { %v2790_v51 = vpop.f32.mrb[4].mxu0 }
  0xf4   :  { %2490 = vtanh.f32 %v291_v16  ;;  %v292_v19 = vmul.f32 0.5, %v291_v16  ;;  %v2792_v52 = vpop.f32.mrb[5].mxu0 }
  0xf6   :  { %2492 = vtanh.f32 %v292_v19 }
  0xf7   :  { %v2794_v53 = vpop.f32.mrb[6].mxu0 }
  0xf8   :  { %v2796_v54 = vpop.f32.mrb[7].mxu0 }
  0xfe   :  { %v2491_v18 = vpop.eup %2490 }
  0xff   :  { %299 = vrot.lane.b32.xlu0 %v2491_v18, %s2616_s25 }
 0x100   :  { %v2493_v20 = vpop.eup %2492 }
 0x101   :  { %v294_v21 = vadd.f32 1.0, %v2493_v20 }
 0x103   :  { %v295_v22 = vmul.f32 0.5, %v294_v21 }
 0x105   :  { %v297_v25 = vmul.f32 0.0, %v295_v22 }
 0x171   :  { %v300_v23 = vpop.permute.xlu0 %299 }
 0x172   :  { %v302_v24 = vmul.f32 %v300_v23, %v295_v22 }
 0x174   :  { %304 = vrot.lane.b32.xlu0 %v302_v24, %s2617_s2 }
 0x1e6   :  { %v305_v26 = vpop.permute.xlu0 %304 }
 0x1e7   :  { %v2715_v27 = vadd.f32 %v305_v26, %v297_v25 }
 0x1e9   :  { %2494 = vtanh.f32 %v2715_v27 }
 0x1f3   :  { %v2495_v45 = vpop.eup %2494 }
 0x1f4   :  { %310 = vrot.lane.b32.xlu1 %v2495_v45, %s2616_s25 }
 0x266   :  { %v311_v47 = vpop.permute.xlu1 %310 }
 0x267   :  { %v313_v48 = vmul.f32 %v311_v47, %v295_v22 }
 0x269   :  { %315 = vrot.lane.b32.xlu1 %v313_v48, %s2617_s2 }
 0x2db   :  { %v316_v55 = vpop.permute.xlu1 %315 }
 0x2dc   :  { %v318_v56 = vsel %vm217_vm2, %v316_v55, 0.0  ;;  %2120 = vmatmul.mubr.msk.f32.vlgmr.msra.gmra.mrb[2].mxu1 %vm217_vm2, %v316_v55 }
 0x2dd   :  { %2109 = vmatmul.mubr.msk.f32.vlgmr.msra.gmra.mrb[8].mxu0 %vm319_vm3, %v318_v56  ;;  %2358 = vmatpush3.bf16.msra.mxu1 %v2727_v31 }
 0x2de   :  { %2359 = vmatprep.subr.bf16.mxu1 %v2613_v0  ;;  %2370 = vmatpush3.bf16.msra.mxu0 %v2681_v5 }
 0x2df   :  { %2371 = vmatprep.subr.bf16.mxu0 %v2613_v0  ;;  %2149 = vmatprep.mubr.msk.f32.mxu0 %vm2614_vm0, %v2615_v1 }
 0x2e0   :  { %2138 = vmatprep.mubr.msk.f32.mxu1 %vm2614_vm0, %v2615_v1 }
 0x2e1   :  { %2361 = vmatpush3.bf16.msra.mxu1 %v2744_v36 }
 0x2e2   :  { %2362 = vmatprep.subr.bf16.mxu1 %v2613_v0  ;;  %2373 = vmatpush3.bf16.msra.mxu0 %v2692_v10 }
 0x2e3   :  { %2374 = vmatprep.subr.bf16.mxu0 %v2613_v0 }
 0x2e5   :  { %2364 = vmatpush3.bf16.msra.mxu1 %v2762_v41 }
 0x2e6   :  { %2365 = vmatprep.subr.bf16.mxu1 %v2613_v0 }
 0x2e9   :  { %2367 = vmatpush3.bf16.msra.mxu1 %v2778_v46 }
 0x2ea   :  { %2386 = vmatprep.subr.bf16.mxu1 %v2613_v0 }
 0x3af   :  { %v485_v59 = vpop.f32.mrb[2].mxu1 }
 0x3b0   :  { %v489_v60 = vadd.f32 %v485_v59, %v156_v57  ;;  %v389_v61 = vpop.f32.mrb[8].mxu0  ;;  %v2121_v62 = vpop.f32.mrb[3].mxu1 }
 0x3b1   :  { %v390_v63 = vadd.f32 %v2822_v58, %v389_v61  ;;  %v2110_v2 = vpop.f32.mrb[9].mxu0 }
 0x3b2   :  { %2496 = vtanh.f32 %v489_v60  ;;  %v490_v6 = vmul.f32 0.5, %v489_v60 }
 0x3b3   :  { %2498 = vtanh.f32 %v390_v63  ;;  %v393_v7 = vmul.f32 0.5, %v390_v63 }
 0x3b4   :  { %2500 = vtanh.f32 %v490_v6 }
 0x3b5   :  { %2502 = vtanh.f32 %v393_v7 }
 0x3bc   :  { %v2497_v3 = vpop.eup %2496 }
 0x3bd   :  { %v2499_v4 = vpop.eup %2498  ;;  %497 = vrot.lane.b32.xlu1 %v2497_v3, %s2616_s25 }
 0x3be   :  { %400 = vrot.lane.b32.xlu0 %v2499_v4, %s2616_s25  ;;  %v2501_v8 = vpop.eup %2500 }
 0x3bf   :  { %v2503_v9 = vpop.eup %2502  ;;  %v492_v11 = vadd.f32 1.0, %v2501_v8 }
 0x3c0   :  { %v395_v13 = vadd.f32 1.0, %v2503_v9 }
 0x3c1   :  { %v493_v14 = vmul.f32 0.5, %v492_v11 }
 0x3c2   :  { %v396_v16 = vmul.f32 0.5, %v395_v13 }
 0x3c3   :  { %v495_v20 = vmul.f32 %v493_v14, %v2715_v27 }
 0x3c4   :  { %v398_v22 = vmul.f32 0.0, %v396_v16 }
 0x42f   :  { %v498_v15 = vpop.permute.xlu1 %497 }
 0x430   :  { %v500_v17 = vmul.f32 %v498_v15, %v493_v14  ;;  %v401_v18 = vpop.permute.xlu0 %400 }
 0x431   :  { %v403_v19 = vmul.f32 %v401_v18, %v396_v16 }
 0x432   :  { %502 = vrot.lane.b32.xlu1 %v500_v17, %s2617_s2 }
 0x433   :  { %405 = vrot.lane.b32.xlu0 %v403_v19, %s2617_s2 }
 0x4a4   :  { %v503_v21 = vpop.permute.xlu1 %502 }
 0x4a5   :  { %v2830_v23 = vadd.f32 %v503_v21, %v495_v20  ;;  %v406_v24 = vpop.permute.xlu0 %405 }
 0x4a6   :  { %v2832_v25 = vadd.f32 %v406_v24, %v398_v22  ;;  %v166_v22 = vadd.f32 %v2786_v49, %v2710_v12 }
 0x4a7   :  { %2504 = vtanh.f32 %v2830_v23 }
 0x4a8   :  { %2506 = vtanh.f32 %v2832_v25 }
 0x4b1   :  { %v2505_v26 = vpop.eup %2504 }
 0x4b2   :  { %v2507_v28 = vpop.eup %2506  ;;  %508 = vrot.lane.b32.xlu1 %v2505_v26, %s2616_s25 }
 0x4b3   :  { %411 = vrot.lane.b32.xlu0 %v2507_v28, %s2616_s25 }
 0x524   :  { %v509_v29 = vpop.permute.xlu1 %508 }
 0x525   :  { %v511_v30 = vmul.f32 %v509_v29, %v493_v14  ;;  %v412_v27 = vpop.permute.xlu0 %411 }
 0x526   :  { %v414_v32 = vmul.f32 %v412_v27, %v396_v16 }
 0x527   :  { %513 = vrot.lane.b32.xlu0 %v511_v30, %s2617_s2 }
 0x528   :  { %517 = vrot.lane.b32.xlu1 %v414_v32, %s2616_s25 }
 0x599   :  { %v514_v33 = vpop.permute.xlu0 %513 }
 0x59a   :  { %v518_v34 = vpop.permute.xlu1 %517  ;;  %2150 = vmatmul.mubr.msk.f32.vlgmr.msra.gmra.mrb[10].mxu0 %vm217_vm2, %v514_v33 }
 0x59b   :  { %v520_v35 = vsel %vm217_vm2, %v514_v33, %v518_v34  ;;  %2376 = vmatpush3.bf16.msra.mxu0 %v2727_v31  ;;  %2168 = vmatprep.mubr.msk.f32.mxu0 %vm2614_vm0, %v2615_v1 }
 0x59c   :  { %2139 = vmatmul.mubr.msk.f32.vlgmr.msra.gmra.mrb[4].mxu1 %vm319_vm3, %v520_v35  ;;  %2377 = vmatprep.subr.bf16.mxu0 %v2613_v0 }
 0x59d   :  { %2388 = vmatpush3.bf16.msra.mxu1 %v2681_v5  ;;  %2179 = vmatprep.mubr.msk.f32.mxu1 %vm2614_vm0, %v2615_v1 }
 0x59e   :  { %2389 = vmatprep.subr.bf16.mxu1 %v2613_v0 }
 0x59f   :  { %2379 = vmatpush3.bf16.msra.mxu0 %v2744_v36 }
 0x5a0   :  { %2380 = vmatprep.subr.bf16.mxu0 %v2613_v0 }
 0x5a1   :  { %2391 = vmatpush3.bf16.msra.mxu1 %v2692_v10 }
 0x5a2   :  { %2392 = vmatprep.subr.bf16.mxu1 %v2613_v0 }
 0x5a3   :  { %2382 = vmatpush3.bf16.msra.mxu0 %v2762_v41 }
 0x5a4   :  { %2383 = vmatprep.subr.bf16.mxu0 %v2613_v0 }
 0x5a7   :  { %2385 = vmatpush3.bf16.msra.mxu0 %v2778_v46 }
 0x5a8   :  { %2404 = vmatprep.subr.bf16.mxu0 %v2613_v0 }
 0x66d   :  { %v686_v38 = vpop.f32.mrb[10].mxu0 }
 0x66e   :  { %v690_v39 = vadd.f32 %v686_v38, %v161_v37  ;;  %v2151_v40 = vpop.f32.mrb[11].mxu0 }
 0x66f   :  { %v590_v42 = vpop.f32.mrb[4].mxu1 }
 0x670   :  { %2508 = vtanh.f32 %v690_v39  ;;  %v591_v43 = vadd.f32 %v2822_v58, %v590_v42  ;;  %v2140_v44 = vpop.f32.mrb[5].mxu1  ;;  %v691_v48 = vmul.f32 0.5, %v690_v39 }
 0x672   :  { %2510 = vtanh.f32 %v591_v43  ;;  %v594_v55 = vmul.f32 0.5, %v591_v43 }
 0x673   :  { %2512 = vtanh.f32 %v691_v48 }
 0x674   :  { %2514 = vtanh.f32 %v594_v55 }
 0x67a   :  { %v2509_v45 = vpop.eup %2508 }
 0x67b   :  { %698 = vrot.lane.b32.xlu1 %v2509_v45, %s2616_s25 }
 0x67c   :  { %v2511_v47 = vpop.eup %2510 }
 0x67d   :  { %601 = vrot.lane.b32.xlu0 %v2511_v47, %s2616_s25  ;;  %v2513_v50 = vpop.eup %2512 }
 0x67e   :  { %v2515_v56 = vpop.eup %2514  ;;  %v693_v57 = vadd.f32 1.0, %v2513_v50 }
 0x67f   :  { %v596_v59 = vadd.f32 1.0, %v2515_v56 }
 0x680   :  { %v694_v60 = vmul.f32 0.5, %v693_v57 }
 0x681   :  { %v597_v63 = vmul.f32 0.5, %v596_v59 }
 0x682   :  { %v696_v4 = vmul.f32 %v694_v60, %v2830_v23 }
 0x683   :  { %v599_v8 = vmul.f32 %v597_v63, %v2832_v25 }
 0x6ed   :  { %v699_v61 = vpop.permute.xlu1 %698 }
 0x6ee   :  { %v701_v62 = vmul.f32 %v699_v61, %v694_v60 }
 0x6ef   :  { %v602_v2 = vpop.permute.xlu0 %601 }
 0x6f0   :  { %703 = vrot.lane.b32.xlu1 %v701_v62, %s2617_s2  ;;  %v604_v3 = vmul.f32 %v602_v2, %v597_v63 }
 0x6f2   :  { %606 = vrot.lane.b32.xlu0 %v604_v3, %s2617_s2 }
 0x762   :  { %v704_v6 = vpop.permute.xlu1 %703 }
 0x763   :  { %v2867_v7 = vadd.f32 %v704_v6, %v696_v4  ;;  %v171_v6 = vadd.f32 %v2710_v12, %v2792_v52 }
 0x764   :  { %v607_v9 = vpop.permute.xlu0 %606 }
 0x765   :  { %2516 = vtanh.f32 %v2867_v7  ;;  %v2871_v11 = vadd.f32 %v607_v9, %v599_v8 }
 0x767   :  { %2518 = vtanh.f32 %v2871_v11 }
 0x76f   :  { %v2517_v13 = vpop.eup %2516 }
 0x770   :  { %709 = vrot.lane.b32.xlu1 %v2517_v13, %s2616_s25 }
 0x771   :  { %v2519_v14 = vpop.eup %2518 }
 0x772   :  { %612 = vrot.lane.b32.xlu0 %v2519_v14, %s2616_s25 }
 0x7e2   :  { %v710_v15 = vpop.permute.xlu1 %709 }
 0x7e3   :  { %v712_v16 = vmul.f32 %v710_v15, %v694_v60 }
 0x7e4   :  { %v613_v17 = vpop.permute.xlu0 %612 }
 0x7e5   :  { %714 = vrot.lane.b32.xlu0 %v712_v16, %s2617_s2  ;;  %v615_v18 = vmul.f32 %v613_v17, %v597_v63 }
 0x7e7   :  { %718 = vrot.lane.b32.xlu1 %v615_v18, %s2616_s25 }
 0x857   :  { %v715_v19 = vpop.permute.xlu0 %714 }
 0x858   :  { %2180 = vmatmul.mubr.msk.f32.vlgmr.msra.gmra.mrb[6].mxu1 %vm217_vm2, %v715_v19 }
 0x859   :  { %2394 = vmatpush3.bf16.msra.mxu1 %v2727_v31  ;;  %2198 = vmatprep.mubr.msk.f32.mxu1 %vm2614_vm0, %v2615_v1  ;;  %v719_v20 = vpop.permute.xlu1 %718 }
 0x85a   :  { %2395 = vmatprep.subr.bf16.mxu1 %v2613_v0  ;;  %v721_v21 = vsel %vm217_vm2, %v715_v19, %v719_v20 }
 0x85b   :  { %2169 = vmatmul.mubr.msk.f32.vlgmr.msra.gmra.mrb[12].mxu0 %vm319_vm3, %v721_v21 }
 0x85c   :  { %2406 = vmatpush3.bf16.msra.mxu0 %v2681_v5  ;;  %2209 = vmatprep.mubr.msk.f32.mxu0 %vm2614_vm0, %v2615_v1 }
 0x85d   :  { %2397 = vmatpush3.bf16.msra.mxu1 %v2744_v36  ;;  %2407 = vmatprep.subr.bf16.mxu0 %v2613_v0 }
 0x85e   :  { %2398 = vmatprep.subr.bf16.mxu1 %v2613_v0 }
 0x860   :  { %2409 = vmatpush3.bf16.msra.mxu0 %v2692_v10 }
 0x861   :  { %2400 = vmatpush3.bf16.msra.mxu1 %v2762_v41  ;;  %2410 = vmatprep.subr.bf16.mxu0 %v2613_v0 }
 0x862   :  { %2401 = vmatprep.subr.bf16.mxu1 %v2613_v0 }
 0x865   :  { %2403 = vmatpush3.bf16.msra.mxu1 %v2778_v46 }
 0x866   :  { %2422 = vmatprep.subr.bf16.mxu1 %v2613_v0 }
 0x92b   :  { %v887_v23 = vpop.f32.mrb[6].mxu1 }
 0x92c   :  { %v891_v24 = vadd.f32 %v887_v23, %v166_v22  ;;  %v2181_v25 = vpop.f32.mrb[7].mxu1 }
 0x92e   :  { %2520 = vtanh.f32 %v891_v24  ;;  %v791_v26 = vpop.f32.mrb[12].mxu0  ;;  %v892_v32 = vmul.f32 0.5, %v891_v24 }
 0x92f   :  { %v792_v28 = vadd.f32 %v2822_v58, %v791_v26  ;;  %v2170_v29 = vpop.f32.mrb[13].mxu0 }
 0x931   :  { %2522 = vtanh.f32 %v792_v28  ;;  %v795_v33 = vmul.f32 0.5, %v792_v28 }
 0x932   :  { %2524 = vtanh.f32 %v892_v32 }
 0x933   :  { %2526 = vtanh.f32 %v795_v33 }
 0x938   :  { %v2521_v30 = vpop.eup %2520 }
 0x939   :  { %899 = vrot.lane.b32.xlu1 %v2521_v30, %s2616_s25 }
 0x93b   :  { %v2523_v27 = vpop.eup %2522 }
 0x93c   :  { %802 = vrot.lane.b32.xlu0 %v2523_v27, %s2616_s25  ;;  %v2525_v49 = vpop.eup %2524 }
 0x93d   :  { %v894_v34 = vadd.f32 1.0, %v2525_v49  ;;  %v2527_v35 = vpop.eup %2526 }
 0x93e   :  { %v797_v38 = vadd.f32 1.0, %v2527_v35 }
 0x93f   :  { %v895_v37 = vmul.f32 0.5, %v894_v34 }
 0x940   :  { %v798_v42 = vmul.f32 0.5, %v797_v38 }
 0x941   :  { %v897_v45 = vmul.f32 %v895_v37, %v2867_v7 }
 0x942   :  { %v800_v55 = vmul.f32 %v798_v42, %v2871_v11 }
 0x9ab   :  { %v900_v39 = vpop.permute.xlu1 %899 }
 0x9ac   :  { %v902_v40 = vmul.f32 %v900_v39, %v895_v37 }
 0x9ae   :  { %904 = vrot.lane.b32.xlu1 %v902_v40, %s2617_s2  ;;  %v803_v43 = vpop.permute.xlu0 %802 }
 0x9af   :  { %v805_v44 = vmul.f32 %v803_v43, %v798_v42 }
 0x9b1   :  { %807 = vrot.lane.b32.xlu0 %v805_v44, %s2617_s2 }
 0xa20   :  { %v905_v47 = vpop.permute.xlu1 %904 }
 0xa21   :  { %v2905_v48 = vadd.f32 %v905_v47, %v897_v45  ;;  %v176_v45 = vadd.f32 %v2790_v51, %v2710_v12 }
 0xa23   :  { %2528 = vtanh.f32 %v2905_v48  ;;  %v808_v50 = vpop.permute.xlu0 %807 }
 0xa24   :  { %v2909_v56 = vadd.f32 %v808_v50, %v800_v55 }
 0xa26   :  { %2530 = vtanh.f32 %v2909_v56 }
 0xa2d   :  { %v2529_v57 = vpop.eup %2528 }
 0xa2e   :  { %910 = vrot.lane.b32.xlu1 %v2529_v57, %s2616_s25 }
 0xa30   :  { %v2531_v59 = vpop.eup %2530 }
 0xa31   :  { %813 = vrot.lane.b32.xlu0 %v2531_v59, %s2616_s25 }
 0xaa0   :  { %v911_v60 = vpop.permute.xlu1 %910 }
 0xaa1   :  { %v913_v61 = vmul.f32 %v911_v60, %v895_v37 }
 0xaa3   :  { %915 = vrot.lane.b32.xlu0 %v913_v61, %s2617_s2  ;;  %v814_v62 = vpop.permute.xlu0 %813 }
 0xaa4   :  { %v816_v63 = vmul.f32 %v814_v62, %v798_v42 }
 0xaa6   :  { %919 = vrot.lane.b32.xlu1 %v816_v63, %s2616_s25 }
 0xb15   :  { %v916_v2 = vpop.permute.xlu0 %915 }
 0xb16   :  { %2210 = vmatmul.mubr.msk.f32.vlgmr.msra.gmra.mrb[14].mxu0 %vm217_vm2, %v916_v2 }
 0xb17   :  { %2412 = vmatpush3.bf16.msra.mxu0 %v2727_v31  ;;  %2228 = vmatprep.mubr.msk.f32.mxu0 %vm2614_vm0, %v2615_v1 }
 0xb18   :  { %2413 = vmatprep.subr.bf16.mxu0 %v2613_v0  ;;  %v920_v3 = vpop.permute.xlu1 %919 }
 0xb19   :  { %v922_v4 = vsel %vm217_vm2, %v916_v2, %v920_v3 }
 0xb1a   :  { %2199 = vmatmul.mubr.msk.f32.vlgmr.msra.gmra.mrb[8].mxu1 %vm319_vm3, %v922_v4 }
 0xb1b   :  { %2415 = vmatpush3.bf16.msra.mxu0 %v2744_v36  ;;  %2424 = vmatpush3.bf16.msra.mxu1 %v2681_v5 }
 0xb1c   :  { %2416 = vmatprep.subr.bf16.mxu0 %v2613_v0  ;;  %2425 = vmatprep.subr.bf16.mxu1 %v2613_v0 }
 0xb1d   :  { %2239 = vmatprep.mubr.msk.f32.mxu1 %vm2614_vm0, %v2615_v1 }
 0xb1f   :  { %2418 = vmatpush3.bf16.msra.mxu0 %v2762_v41  ;;  %2427 = vmatpush3.bf16.msra.mxu1 %v2692_v10 }
 0xb20   :  { %2419 = vmatprep.subr.bf16.mxu0 %v2613_v0  ;;  %2428 = vmatprep.subr.bf16.mxu1 %v2613_v0 }
 0xb23   :  { %2421 = vmatpush3.bf16.msra.mxu0 %v2778_v46 }
 0xb24   :  { %2440 = vmatprep.subr.bf16.mxu0 %v2613_v0 }
 0xbe9   :  { %v1088_v7 = vpop.f32.mrb[14].mxu0 }
 0xbea   :  { %v1092_v8 = vadd.f32 %v1088_v7, %v171_v6  ;;  %v2211_v9 = vpop.f32.mrb[15].mxu0 }
 0xbec   :  { %2532 = vtanh.f32 %v1092_v8  ;;  %v1093_v17 = vmul.f32 0.5, %v1092_v8 }
 0xbed   :  { %v992_v11 = vpop.f32.mrb[8].mxu1 }
 0xbee   :  { %v993_v13 = vadd.f32 %v2822_v58, %v992_v11  ;;  %v2200_v14 = vpop.f32.mrb[9].mxu1 }
 0xbf0   :  { %2534 = vtanh.f32 %v993_v13  ;;  %v996_v18 = vmul.f32 0.5, %v993_v13 }
 0xbf1   :  { %2536 = vtanh.f32 %v1093_v17 }
 0xbf2   :  { %2538 = vtanh.f32 %v996_v18 }
 0xbf6   :  { %v2533_v15 = vpop.eup %2532 }
 0xbf7   :  { %1100 = vrot.lane.b32.xlu1 %v2533_v15, %s2616_s25 }
 0xbfa   :  { %v2535_v16 = vpop.eup %2534 }
 0xbfb   :  { %1003 = vrot.lane.b32.xlu0 %v2535_v16, %s2616_s25  ;;  %v2537_v52 = vpop.eup %2536 }
 0xbfc   :  { %v1095_v19 = vadd.f32 1.0, %v2537_v52  ;;  %v2539_v20 = vpop.eup %2538 }
 0xbfd   :  { %v998_v23 = vadd.f32 1.0, %v2539_v20 }
 0xbfe   :  { %v1096_v21 = vmul.f32 0.5, %v1095_v19 }
 0xbff   :  { %v999_v25 = vmul.f32 0.5, %v998_v23 }
 0xc00   :  { %v1098_v29 = vmul.f32 %v1096_v21, %v2905_v48 }
 0xc01   :  { %v1001_v32 = vmul.f32 %v999_v25, %v2909_v56 }
 0xc69   :  { %v1101_v22 = vpop.permute.xlu1 %1100 }
 0xc6a   :  { %v1103_v24 = vmul.f32 %v1101_v22, %v1096_v21 }
 0xc6c   :  { %1105 = vrot.lane.b32.xlu1 %v1103_v24, %s2617_s2 }
 0xc6d   :  { %v1004_v26 = vpop.permute.xlu0 %1003 }
 0xc6e   :  { %v1006_v28 = vmul.f32 %v1004_v26, %v999_v25 }
 0xc70   :  { %1008 = vrot.lane.b32.xlu0 %v1006_v28, %s2617_s2 }
 0xcde   :  { %v1106_v30 = vpop.permute.xlu1 %1105 }
 0xcdf   :  { %v2943_v27 = vadd.f32 %v1106_v30, %v1098_v29 }
 0xce1   :  { %2540 = vtanh.f32 %v2943_v27 }
 0xce2   :  { %v1009_v33 = vpop.permute.xlu0 %1008 }
 0xce3   :  { %v2947_v49 = vadd.f32 %v1009_v33, %v1001_v32 }
 0xce5   :  { %2542 = vtanh.f32 %v2947_v49 }
 0xceb   :  { %v2541_v34 = vpop.eup %2540 }
 0xcec   :  { %1111 = vrot.lane.b32.xlu1 %v2541_v34, %s2616_s25 }
 0xcef   :  { %v2543_v35 = vpop.eup %2542 }
 0xcf0   :  { %1014 = vrot.lane.b32.xlu0 %v2543_v35, %s2616_s25 }
 0xd5e   :  { %v1112_v37 = vpop.permute.xlu1 %1111 }
 0xd5f   :  { %v1114_v38 = vmul.f32 %v1112_v37, %v1096_v21 }
 0xd61   :  { %1116 = vrot.lane.b32.xlu0 %v1114_v38, %s2617_s2 }
 0xd62   :  { %v1015_v39 = vpop.permute.xlu0 %1014 }
 0xd63   :  { %v1017_v40 = vmul.f32 %v1015_v39, %v999_v25 }
 0xd65   :  { %1120 = vrot.lane.b32.xlu1 %v1017_v40, %s2616_s25 }
 0xdd3   :  { %v1117_v42 = vpop.permute.xlu0 %1116 }
 0xdd4   :  { %2240 = vmatmul.mubr.msk.f32.vlgmr.msra.gmra.mrb[10].mxu1 %vm217_vm2, %v1117_v42 }
 0xdd5   :  { %2430 = vmatpush3.bf16.msra.mxu1 %v2727_v31  ;;  %2258 = vmatprep.mubr.msk.f32.mxu1 %vm2614_vm0, %v2615_v1 }
 0xdd6   :  { %2431 = vmatprep.subr.bf16.mxu1 %v2613_v0 }
 0xdd7   :  { %v1121_v43 = vpop.permute.xlu1 %1120 }
 0xdd8   :  { %v1123_v44 = vsel %vm217_vm2, %v1117_v42, %v1121_v43 }
 0xdd9   :  { %2433 = vmatpush3.bf16.msra.mxu1 %v2744_v36  ;;  %2229 = vmatmul.mubr.msk.f32.vlgmr.msra.gmra.mrb[16].mxu0 %vm319_vm3, %v1123_v44 }
 0xdda   :  { %2434 = vmatprep.subr.bf16.mxu1 %v2613_v0  ;;  %2442 = vmatpush3.bf16.msra.mxu0 %v2681_v5 }
 0xddb   :  { %2269 = vmatprep.mubr.msk.f32.mxu0 %vm2614_vm0, %v2615_v1  ;;  %2443 = vmatprep.subr.bf16.mxu0 %v2613_v0 }
 0xddd   :  { %2436 = vmatpush3.bf16.msra.mxu1 %v2762_v41 }
 0xdde   :  { %2437 = vmatprep.subr.bf16.mxu1 %v2613_v0  ;;  %2445 = vmatpush3.bf16.msra.mxu0 %v2692_v10 }
 0xddf   :  { %2446 = vmatprep.subr.bf16.mxu0 %v2613_v0 }
 0xde1   :  { %2439 = vmatpush3.bf16.msra.mxu1 %v2778_v46 }
 0xde2   :  { %2458 = vmatprep.subr.bf16.mxu1 %v2613_v0 }
 0xea7   :  { %v1289_v47 = vpop.f32.mrb[10].mxu1 }
 0xea8   :  { %v1293_v48 = vadd.f32 %v1289_v47, %v176_v45  ;;  %v2241_v55 = vpop.f32.mrb[11].mxu1 }
 0xeaa   :  { %2544 = vtanh.f32 %v1293_v48  ;;  %v1294_v61 = vmul.f32 0.5, %v1293_v48 }
 0xeac   :  { %v1193_v50 = vpop.f32.mrb[16].mxu0 }
 0xead   :  { %v1194_v56 = vadd.f32 %v2822_v58, %v1193_v50  ;;  %v2230_v57 = vpop.f32.mrb[17].mxu0 }
 0xeaf   :  { %2546 = vtanh.f32 %v1194_v56  ;;  %v1197_v62 = vmul.f32 0.5, %v1194_v56 }
 0xeb0   :  { %2548 = vtanh.f32 %v1294_v61 }
 0xeb1   :  { %2550 = vtanh.f32 %v1197_v62 }
 0xeb4   :  { %v2545_v59 = vpop.eup %2544 }
 0xeb5   :  { %1301 = vrot.lane.b32.xlu1 %v2545_v59, %s2616_s25 }
 0xeb9   :  { %v2547_v60 = vpop.eup %2546 }
 0xeba   :  { %1204 = vrot.lane.b32.xlu0 %v2547_v60, %s2616_s25  ;;  %v2549_v51 = vpop.eup %2548 }
 0xebb   :  { %v1296_v63 = vadd.f32 1.0, %v2549_v51  ;;  %v2551_v2 = vpop.eup %2550 }
 0xebc   :  { %v1199_v7 = vadd.f32 1.0, %v2551_v2 }
 0xebd   :  { %v1297_v3 = vmul.f32 0.5, %v1296_v63 }
 0xebe   :  { %v1200_v8 = vmul.f32 0.5, %v1199_v7 }
 0xebf   :  { %v1299_v13 = vmul.f32 %v1297_v3, %v2943_v27 }
 0xec0   :  { %v1202_v16 = vmul.f32 %v1200_v8, %v2947_v49 }
 0xf27   :  { %v1302_v4 = vpop.permute.xlu1 %1301 }
 0xf28   :  { %v1304_v6 = vmul.f32 %v1302_v4, %v1297_v3 }
 0xf2a   :  { %1306 = vrot.lane.b32.xlu1 %v1304_v6, %s2617_s2 }
 0xf2c   :  { %v1205_v9 = vpop.permute.xlu0 %1204 }
 0xf2d   :  { %v1207_v11 = vmul.f32 %v1205_v9, %v1200_v8 }
 0xf2f   :  { %1209 = vrot.lane.b32.xlu0 %v1207_v11, %s2617_s2 }
 0xf9c   :  { %v1307_v14 = vpop.permute.xlu1 %1306 }
 0xf9d   :  { %v2981_v15 = vadd.f32 %v1307_v14, %v1299_v13 }
 0xf9f   :  { %2552 = vtanh.f32 %v2981_v15 }
 0xfa1   :  { %v1210_v17 = vpop.permute.xlu0 %1209 }
 0xfa2   :  { %v2985_v18 = vadd.f32 %v1210_v17, %v1202_v16 }
 0xfa4   :  { %2554 = vtanh.f32 %v2985_v18 }
 0xfa9   :  { %v2553_v52 = vpop.eup %2552 }
 0xfaa   :  { %1312 = vrot.lane.b32.xlu1 %v2553_v52, %s2616_s25 }
 0xfae   :  { %v2555_v19 = vpop.eup %2554 }
 0xfaf   :  { %1215 = vrot.lane.b32.xlu0 %v2555_v19, %s2616_s25 }
0x101c   :  { %v1313_v20 = vpop.permute.xlu1 %1312 }
0x101d   :  { %v1315_v21 = vmul.f32 %v1313_v20, %v1297_v3 }
0x101f   :  { %1317 = vrot.lane.b32.xlu0 %v1315_v21, %s2617_s2 }
0x1021   :  { %v1216_v22 = vpop.permute.xlu0 %1215 }
0x1022   :  { %v1218_v23 = vmul.f32 %v1216_v22, %v1200_v8 }
0x1024   :  { %1321 = vrot.lane.b32.xlu1 %v1218_v23, %s2616_s25 }
0x1091   :  { %v1318_v24 = vpop.permute.xlu0 %1317 }
0x1092   :  { %2270 = vmatmul.mubr.msk.f32.vlgmr.msra.gmra.mrb[18].mxu0 %vm217_vm2, %v1318_v24 }
0x1093   :  { %2448 = vmatpush3.bf16.msra.mxu0 %v2727_v31  ;;  %2288 = vmatprep.mubr.msk.f32.mxu0 %vm2614_vm0, %v2615_v1 }
0x1094   :  { %2449 = vmatprep.subr.bf16.mxu0 %v2613_v0 }
0x1096   :  { %v1322_v25 = vpop.permute.xlu1 %1321 }
0x1097   :  { %2451 = vmatpush3.bf16.msra.mxu0 %v2744_v36  ;;  %v1324_v26 = vsel %vm217_vm2, %v1318_v24, %v1322_v25 }
0x1098   :  { %2452 = vmatprep.subr.bf16.mxu0 %v2613_v0  ;;  %2259 = vmatmul.mubr.msk.f32.vlgmr.msra.gmra.mrb[12].mxu1 %vm319_vm3, %v1324_v26 }
0x1099   :  { %2460 = vmatpush3.bf16.msra.mxu1 %v2681_v5  ;;  %2299 = vmatprep.mubr.msk.f32.mxu1 %vm2614_vm0, %v2615_v1  ;;  %v181_v5 = vadd.f32 %v2710_v12, %v2796_v54 }
0x109a   :  { %2461 = vmatprep.subr.bf16.mxu1 %v2613_v0 }
0x109b   :  { %2454 = vmatpush3.bf16.msra.mxu0 %v2762_v41 }
0x109c   :  { %2455 = vmatprep.subr.bf16.mxu0 %v2613_v0 }
0x109d   :  { %2463 = vmatpush3.bf16.msra.mxu1 %v2692_v10 }
0x109e   :  { %2464 = vmatprep.subr.bf16.mxu1 %v2613_v0 }
0x109f   :  { %2457 = vmatpush3.bf16.msra.mxu0 %v2778_v46 }
0x10a0   :  { %2476 = vmatprep.subr.bf16.mxu0 %v2613_v0 }
0x1165   :  { %v1490_v28 = vpop.f32.mrb[18].mxu0 }
0x1166   :  { %v1494_v29 = vadd.f32 %v1490_v28, %v181_v5  ;;  %v2271_v30 = vpop.f32.mrb[19].mxu0 }
0x1168   :  { %2556 = vtanh.f32 %v1494_v29  ;;  %v1495_v34 = vmul.f32 0.5, %v1494_v29 }
0x116b   :  { %v1394_v27 = vpop.f32.mrb[12].mxu1 }
0x116c   :  { %v1395_v32 = vadd.f32 %v2822_v58, %v1394_v27  ;;  %v2260_v33 = vpop.f32.mrb[13].mxu1 }
0x116e   :  { %2558 = vtanh.f32 %v1395_v32  ;;  %v1398_v35 = vmul.f32 0.5, %v1395_v32 }
0x116f   :  { %2560 = vtanh.f32 %v1495_v34 }
0x1170   :  { %2562 = vtanh.f32 %v1398_v35 }
0x1172   :  { %v2557_v49 = vpop.eup %2556 }
0x1173   :  { %1502 = vrot.lane.b32.xlu1 %v2557_v49, %s2616_s25 }
0x1178   :  { %v2559_v10 = vpop.eup %2558 }
0x1179   :  { %1405 = vrot.lane.b32.xlu0 %v2559_v10, %s2616_s25  ;;  %v2561_v54 = vpop.eup %2560 }
0x117a   :  { %v1497_v37 = vadd.f32 1.0, %v2561_v54  ;;  %v2563_v38 = vpop.eup %2562 }
0x117b   :  { %v1400_v43 = vadd.f32 1.0, %v2563_v38 }
0x117c   :  { %v1498_v39 = vmul.f32 0.5, %v1497_v37 }
0x117d   :  { %v1401_v44 = vmul.f32 0.5, %v1400_v43 }
0x117e   :  { %v1500_v48 = vmul.f32 %v1498_v39, %v2981_v15 }
0x117f   :  { %v1403_v56 = vmul.f32 %v1401_v44, %v2985_v18 }
0x11e5   :  { %v1503_v40 = vpop.permute.xlu1 %1502 }
0x11e6   :  { %v1505_v42 = vmul.f32 %v1503_v40, %v1498_v39 }
0x11e8   :  { %1507 = vrot.lane.b32.xlu1 %v1505_v42, %s2617_s2 }
0x11eb   :  { %v1406_v45 = vpop.permute.xlu0 %1405 }
0x11ec   :  { %v1408_v47 = vmul.f32 %v1406_v45, %v1401_v44 }
0x11ee   :  { %1410 = vrot.lane.b32.xlu0 %v1408_v47, %s2617_s2 }
0x125a   :  { %v1508_v55 = vpop.permute.xlu1 %1507 }
0x125b   :  { %v1510_v50 = vadd.f32 %v1508_v55, %v1500_v48 }
0x125d   :  { %2564 = vtanh.f32 %v1510_v50 }
0x1260   :  { %v1411_v57 = vpop.permute.xlu0 %1410 }
0x1261   :  { %v1413_v59 = vadd.f32 %v1411_v57, %v1403_v56  ;;  %v1824_v56 = vld [vmem:[%s3082_s6 + $0x10] sm:$0xff] }
0x1263   :  { %2566 = vtanh.f32 %v1413_v59 }
0x1267   :  { %v2565_v60 = vpop.eup %2564 }
0x1268   :  { %1513 = vrot.lane.b32.xlu1 %v2565_v60, %s2616_s25 }
0x126d   :  { %v2567_v61 = vpop.eup %2566 }
0x126e   :  { %1416 = vrot.lane.b32.xlu0 %v2567_v61, %s2616_s25 }
0x12da   :  { %v1514_v62 = vpop.permute.xlu1 %1513 }
0x12db   :  { %v1516_v51 = vmul.f32 %v1514_v62, %v1498_v39 }
0x12dd   :  { %1518 = vrot.lane.b32.xlu0 %v1516_v51, %s2617_s2 }
0x12e0   :  { %v1417_v63 = vpop.permute.xlu0 %1416 }
0x12e1   :  { %v1419_v2 = vmul.f32 %v1417_v63, %v1401_v44 }
0x12e3   :  { %1522 = vrot.lane.b32.xlu1 %v1419_v2, %s2616_s25  ;;  %v1939_v2 = vld [vmem:[%s3083_s7] ss:$0 sm:$0xff] }
0x134f   :  { %v1519_v3 = vpop.permute.xlu0 %1518 }
0x1350   :  { %2300 = vmatmul.mubr.msk.f32.vlgmr.msra.gmra.mrb[14].mxu1 %vm217_vm2, %v1519_v3 }
0x1351   :  { %2466 = vmatpush3.bf16.msra.mxu1 %v2727_v31  ;;  %2318 = vmatprep.mubr.msk.f32.mxu1 %vm2614_vm0, %v2615_v1  ;;  %v186_v31 = vadd.f32 %v2794_v53, %v2710_v12 }
0x1352   :  { %2467 = vmatprep.subr.bf16.mxu1 %v2613_v0 }
0x1355   :  { %2469 = vmatpush3.bf16.msra.mxu1 %v2744_v36  ;;  %v1523_v4 = vpop.permute.xlu1 %1522 }
0x1356   :  { %2470 = vmatprep.subr.bf16.mxu1 %v2613_v0  ;;  %v1525_v6 = vsel %vm217_vm2, %v1519_v3, %v1523_v4 }
0x1357   :  { %2289 = vmatmul.mubr.msk.f32.vlgmr.msra.gmra.mrb[20].mxu0 %vm319_vm3, %v1525_v6 }
0x1358   :  { %2329 = vmatprep.mubr.msk.f32.mxu0 %vm2614_vm0, %v2615_v1 }
0x1359   :  { %2472 = vmatpush3.bf16.msra.mxu1 %v2762_v41 }
0x135a   :  { %2473 = vmatprep.subr.bf16.mxu1 %v2613_v0 }
0x135d   :  { %2475 = vmatpush3.bf16.msra.mxu1 %v2778_v46 }
0x1423   :  { %v1691_v36 = vpop.f32.mrb[14].mxu1 }
0x1424   :  { %v1695_v7 = vadd.f32 %v1691_v36, %v186_v31  ;;  %v2301_v8 = vpop.f32.mrb[15].mxu1 }
0x1426   :  { %2568 = vtanh.f32 %v1695_v7  ;;  %v1696_v14 = vmul.f32 0.5, %v1695_v7 }
0x142a   :  { %v1595_v9 = vpop.f32.mrb[20].mxu0 }
0x142b   :  { %v1596_v11 = vadd.f32 %v2822_v58, %v1595_v9  ;;  %v2290_v13 = vpop.f32.mrb[21].mxu0 }
0x142d   :  { %2570 = vtanh.f32 %v1596_v11  ;;  %v1599_v46 = vmul.f32 0.5, %v1596_v11 }
0x142e   :  { %2572 = vtanh.f32 %v1696_v14 }
0x142f   :  { %2574 = vtanh.f32 %v1599_v46 }
0x1430   :  { %v2569_v41 = vpop.eup %2568 }
0x1431   :  { %1703 = vrot.lane.b32.xlu1 %v2569_v41, %s2616_s25 }
0x1437   :  { %v2571_v1 = vpop.eup %2570 }
0x1438   :  { %1606 = vrot.lane.b32.xlu0 %v2571_v1, %s2616_s25  ;;  %v2573_v12 = vpop.eup %2572 }
0x1439   :  { %v1698_v53 = vadd.f32 1.0, %v2573_v12  ;;  %v2575_v16 = vpop.eup %2574 }
0x143a   :  { %v1601_v52 = vadd.f32 1.0, %v2575_v16 }
0x143b   :  { %v1699_v15 = vmul.f32 0.5, %v1698_v53 }
0x143c   :  { %v1602_v19 = vmul.f32 0.5, %v1601_v52 }
0x143d   :  { %v1701_v22 = vmul.f32 %v1699_v15, %v1510_v50  ;;  %v1823_v50 = vld [vmem:[%s3082_s6 + $0x8] sm:$0xff] }
0x143e   :  { %v1604_v25 = vmul.f32 %v1602_v19, %v1413_v59  ;;  %v1825_v59 = vld [vmem:[%s3082_s6 + $0x18] sm:$0xff] }
0x143f   :  { %v2480_v60 = vpack.c.bf16 %v1825_v59, %v1824_v56 }
0x14a3   :  { %v1704_v17 = vpop.permute.xlu1 %1703 }
0x14a4   :  { %v1706_v18 = vmul.f32 %v1704_v17, %v1699_v15 }
0x14a6   :  { %1708 = vrot.lane.b32.xlu1 %v1706_v18, %s2617_s2 }
0x14aa   :  { %v1607_v20 = vpop.permute.xlu0 %1606 }
0x14ab   :  { %v1609_v21 = vmul.f32 %v1607_v20, %v1602_v19 }
0x14ad   :  { %1611 = vrot.lane.b32.xlu0 %v1609_v21, %s2617_s2 }
0x1518   :  { %v1709_v23 = vpop.permute.xlu1 %1708 }
0x1519   :  { %v1711_v24 = vadd.f32 %v1709_v23, %v1701_v22 }
0x151b   :  { %2576 = vtanh.f32 %v1711_v24 }
0x151f   :  { %v1612_v26 = vpop.permute.xlu0 %1611 }
0x1520   :  { %v1614_v5 = vadd.f32 %v1612_v26, %v1604_v25 }
0x1522   :  { %2578 = vtanh.f32 %v1614_v5 }
0x1525   :  { %v2577_v28 = vpop.eup %2576 }
0x1526   :  { %1714 = vrot.lane.b32.xlu1 %v2577_v28, %s2616_s25 }
0x152c   :  { %v2579_v29 = vpop.eup %2578 }
0x152d   :  { %1617 = vrot.lane.b32.xlu0 %v2579_v29, %s2616_s25 }
0x1598   :  { %v1715_v30 = vpop.permute.xlu1 %1714 }
0x1599   :  { %v1717_v27 = vmul.f32 %v1715_v30, %v1699_v15 }
0x159b   :  { %1719 = vrot.lane.b32.xlu0 %v1717_v27, %s2617_s2 }
0x159f   :  { %v1618_v32 = vpop.permute.xlu0 %1617 }
0x15a0   :  { %v1620_v33 = vmul.f32 %v1618_v32, %v1602_v19 }
0x15a2   :  { %1723 = vrot.lane.b32.xlu1 %v1620_v33, %s2616_s25 }
0x160d   :  { %v1720_v49 = vpop.permute.xlu0 %1719 }
0x1614   :  { %v1724_v10 = vpop.permute.xlu1 %1723 }
0x1615   :  { %v1726_v34 = vsel %vm217_vm2, %v1720_v49, %v1724_v10 }
0x1616   :  { %2319 = vmatmul.mubr.msk.f32.vlgmr.msra.gmra.mrb[16].mxu1 %vm319_vm3, %v1726_v34 }
0x16e9   :  { %v1796_v35 = vpop.f32.mrb[16].mxu1 }
0x16ea   :  { %v1797_v54 = vadd.f32 %v2822_v58, %v1796_v35  ;;  %v2320_v37 = vpop.f32.mrb[17].mxu1  ;;  %v1822_v58 = vld [vmem:[%s3082_s6] sm:$0xff] }
0x16eb   :  { %v2477_v57 = vpack.c.bf16 %v1823_v50, %v1822_v58 }
0x16ec   :  { %2580 = vtanh.f32 %v1797_v54  ;;  %v1800_v39 = vmul.f32 0.5, %v1797_v54 }
0x16ed   :  { %2478 = vmatpush3.bf16.msra.mxu0 %v2477_v57 }
0x16ee   :  { %2582 = vtanh.f32 %v1800_v39  ;;  %2479 = vmatprep.subr.bf16.mxu0 %v2613_v0 }
0x16f1   :  { %2481 = vmatpush3.bf16.msra.mxu0 %v2480_v60 }
0x16f6   :  { %v2581_v38 = vpop.eup %2580 }
0x16f7   :  { %1807 = vrot.lane.b32.xlu0 %v2581_v38, %s2616_s25 }
0x16f8   :  { %v2583_v40 = vpop.eup %2582 }
0x16f9   :  { %v1802_v42 = vadd.f32 1.0, %v2583_v40 }
0x16fb   :  { %v1803_v43 = vmul.f32 0.5, %v1802_v42 }
0x16fd   :  { %v1805_v47 = vmul.f32 %v1803_v43, %v1614_v5 }
0x1769   :  { %v1808_v44 = vpop.permute.xlu0 %1807 }
0x176a   :  { %v1810_v45 = vmul.f32 %v1808_v44, %v1803_v43 }
0x176c   :  { %1812 = vrot.lane.b32.xlu1 %v1810_v45, %s2617_s2 }
0x17de   :  { %v1813_v48 = vpop.permute.xlu1 %1812 }
0x17df   :  { %v1815_v55 = vadd.f32 %v1813_v48, %v1805_v47 }
0x17e1   :  { %2584 = vtanh.f32 %v1815_v55 }
0x17eb   :  { %v2585_v61 = vpop.eup %2584 }
0x17ec   :  { %1818 = vrot.lane.b32.xlu0 %v2585_v61, %s2616_s25 }
0x185e   :  { %v1819_v62 = vpop.permute.xlu0 %1818 }
0x185f   :  { %v1821_v51 = vmul.f32 %v1819_v62, %v1803_v43 }
0x1861   :  { %1834 = vrot.lane.b32.xlu1 %v1821_v51, %s2617_s2 }
0x18d3   :  { %v1835_v63 = vpop.permute.xlu1 %1834 }
0x18d4   :  { %2330 = vmatmul.mubr.msk.f32.vlgmr.msra.gmra.mrb[22].mxu0 %vm217_vm2, %v1835_v63 }
0x19a7   :  { %v1904_v3 = vpop.f32.mrb[22].mxu0 }
0x19a8   :  { %v1905_v4 = vadd.f32 %v1939_v2, %v1904_v3  ;;  %v2331_v6 = vpop.f32.mrb[23].mxu0 }
0x19aa   :  { %1908 = vst [vmem:[%s3084_s8] sm:$0xff] %v1905_v4 }
0x19ab   :  { %1913 = vsyncpa [#allocation4], 1 }

</bundles_post_ra>
